<compile_context>
chip_gen: v7x
topology: tpu7x:2x2x1
jax: 0.10.0
libtpu: 0.0.40
codegen_flags: <defaults>
</compile_context>

<pallas_src>
import functools

import numpy as np
import jax
import jax.numpy as jnp
from jax import lax
from jax.experimental import pallas as pl
from jax.experimental.pallas import tpu as pltpu

# 3x3 taps, row-major (dy, dx) -- matches PyTorch conv weight (ky, kx) order.
_TAPS = tuple((dy, dx) for dy in (-1, 0, 1) for dx in (-1, 0, 1))


# ---------------------------------------------------------------------------
# Host-side constant builders
# ---------------------------------------------------------------------------

def _resize_matrix(in_size, out_size):
    """1-D bilinear interpolation matrix, PyTorch align_corners=False semantics."""
    scale = in_size / out_size
    i = np.arange(out_size)
    src = (i + 0.5) * scale - 0.5
    src = np.maximum(src, 0.0)
    i0 = np.minimum(np.floor(src).astype(np.int64), in_size - 1)
    i1 = np.minimum(i0 + 1, in_size - 1)
    l1 = (src - i0).astype(np.float32)
    l0 = 1.0 - l1
    A = np.zeros((out_size, in_size), np.float32)
    A[i, i0] += l0
    A[i, i1] += l1
    return A


def _bilinear_kron(Hin, Win, h, w):
    """(Hin*Win, h*w) matrix so that resized_flat = x_flat @ M (row-major flat)."""
    Ah = _resize_matrix(Hin, h)          # (h, Hin)
    Aw = _resize_matrix(Win, w)          # (w, Win)
    K = np.kron(Ah, Aw)                  # (h*w, Hin*Win)
    return jnp.asarray(K.T)              # (Hin*Win, h*w)


def _col_masks(h, w):
    """(2, h*w) 0/1 column-validity masks for dx=-1 (row 0) and dx=+1 (row 1).

    Row-out-of-bounds taps already read zeros from the (w+1)-wide lane pads,
    so only column wrap-around needs masking, and it depends only on dx.
    """
    cols = np.arange(h * w) % w
    m = np.zeros((2, h * w), np.float32)
    m[0] = (cols >= 1).astype(np.float32)        # dx = -1 taps valid where c >= 1
    m[1] = (cols <= w - 2).astype(np.float32)    # dx = +1 taps valid where c <= w-2
    return jnp.asarray(m)


# ---------------------------------------------------------------------------
# Fused Pallas kernel
# ---------------------------------------------------------------------------

def _fused_kernel(x_ref, wcs_ref, bcs_ref, rm_ref, mask_ref,
                  fw_ref, fs_ref, o_ref, *, C, h, w, res_depth):
    hw = h * w
    x = x_ref[0]                                                    # (Cin, Hin*Win)

    # channel_selector (1x1 conv): (Cout, Cin) @ (Cin, Hin*Win)
    cs = jnp.dot(wcs_ref[...], x, preferred_element_type=jnp.float32) + bcs_ref[...]

    # bilinear resize (align_corners=False): one lane-dense matmul.
    # Used for both cav_feature_1 and cav_feature_0 (wg_att_* identity).
    resized = jnp.dot(cs, rm_ref[...], preferred_element_type=jnp.float32)  # (C, hw)

    mask_l = mask_ref[0:1, :]                                       # (1, hw) dx=-1
    mask_r = mask_ref[1:2, :]                                       # (1, hw) dx=+1
    zpad = jnp.zeros((C, w + 1), jnp.float32)

    def conv3x3_bn(z, wmat, shift, lrelu):
        # z: (C, hw); wmat: (C, 9*C), columns tap-major ((ky,kx) row-major) then
        # input channel; BN scale already folded into wmat, bias+shift into shift.
        zp = jnp.concatenate([zpad, z, zpad], axis=1)               # (C, hw + 2w + 2)
        acc_c = jnp.zeros((C, hw), jnp.float32)                     # dx = 0 taps
        acc_l = jnp.zeros((C, hw), jnp.float32)                     # dx = -1 taps
        acc_r = jnp.zeros((C, hw), jnp.float32)                     # dx = +1 taps
        for t, (dy, dx) in enumerate(_TAPS):
            start = (w + 1) + dy * w + dx                           # static offset
            patch = zp[:, start:start + hw]                         # (C, hw)
            w_t = wmat[:, t * C:(t + 1) * C]                        # (C, C)
            d = jnp.dot(w_t, patch, preferred_element_type=jnp.float32)
            if dx == 0:
                acc_c = acc_c + d
            elif dx == -1:
                acc_l = acc_l + d
            else:
                acc_r = acc_r + d
        # mask * (W @ patch) == W @ (mask * patch): mask once per dx group.
        y = acc_c + acc_l * mask_l + acc_r * mask_r + shift
        if lrelu:
            y = jnp.where(y > 0, y, 0.01 * y)                       # LeakyReLU(0.01)
        return y

    cur = resized                                                   # cav_feature_2
    for blk in range(res_depth):
        y = conv3x3_bn(cur, fw_ref[2 * blk], fs_ref[2 * blk], lrelu=True)
        y = conv3x3_bn(y, fw_ref[2 * blk + 1], fs_ref[2 * blk + 1], lrelu=False)
        cur = cur + y                                               # residual skip

    # cav_feature_2 += cav_feature_1 ; return cav_feature_0 + cav_feature_2
    o_ref[0] = resized + (cur + resized)


def learnable_resizer_forward(params, ego_feature, cav_feature):
    """ego_feature: (C_ego, h, w);  cav_feature: (N, Cin, Hc, Wc) NCHW."""
    _, h, w = ego_feature.shape
    N, Cin, Hin, Win = cav_feature.shape
    C = params["cs_w"].shape[0]
    depth = params["rw"].shape[0] // 2
    hw, hwin = h * w, Hin * Win

    x = cav_feature.reshape(N, Cin, hwin)        # NCHW flat -- no transpose needed
    rm = _bilinear_kron(Hin, Win, h, w)          # (hwin, hw)
    mask = _col_masks(h, w)                      # (2, hw)

    # Fold conv bias + inference BatchNorm into the conv weights (host side):
    #   y = scale*(W@p + b) + shift = (scale*W)@p + (scale*b + shift)
    fw = params["rw"] * params["rscale"]                                  # (2d, C, 9C)
    fs = params["rb"] * params["rscale"] + params["rshift"]               # (2d, C, 1)

    kernel = functools.partial(_fused_kernel, C=C, h=h, w=w, res_depth=depth)
    const2 = lambda n: (0, 0)
    const3 = lambda n: (0, 0, 0)

    out = pl.pallas_call(
        kernel,
        out_shape=jax.ShapeDtypeStruct((N, C, hw), jnp.float32),
        grid=(N,),
        in_specs=[
            pl.BlockSpec((1, Cin, hwin), lambda n: (n, 0, 0)),      # cav features
            pl.BlockSpec((C, Cin), const2),                         # channel_selector W
            pl.BlockSpec((C, 1), const2),                           # channel_selector b
            pl.BlockSpec((hwin, hw), const2),                       # resize matrix
            pl.BlockSpec((2, hw), const2),                          # column masks
            pl.BlockSpec((2 * depth, C, 9 * C), const3),            # folded conv weights
            pl.BlockSpec((2 * depth, C, 1), const3),                # folded conv shifts
        ],
        out_specs=pl.BlockSpec((1, C, hw), lambda n: (n, 0, 0)),
        compiler_params=pltpu.CompilerParams(dimension_semantics=("parallel",)),
    )(x, params["cs_w"], params["cs_b"], rm, mask, fw, fs)
    return out.reshape(N, C, h, w)


# ---------------------------------------------------------------------------
# Parameters
# ---------------------------------------------------------------------------

def init_params(key, input_channel, output_channel, res_depth, res_dim, eps=1e-5):
    n_conv = 2 * res_depth
    keys = jax.random.split(key, 2 + 2 * n_conv)
    cs_w = 0.1 * jax.random.normal(keys[0], (output_channel, input_channel), jnp.float32)
    cs_b = 0.1 * jax.random.normal(keys[1], (output_channel, 1), jnp.float32)

    # residual-block convs: generated in PyTorch (Cout, Cin, 3, 3) layout, then
    # packed to (Cout, 9*Cin) with columns ordered tap-major ((ky,kx) row-major).
    rw, rb = [], []
    for i in range(n_conv):
        wt = 0.1 * jax.random.normal(keys[2 + 2 * i], (res_dim, res_dim, 3, 3), jnp.float32)
        bt = 0.1 * jax.random.normal(keys[3 + 2 * i], (res_dim,), jnp.float32)
        rw.append(jnp.transpose(wt, (0, 2, 3, 1)).reshape(res_dim, 9 * res_dim))
        rb.append(bt.reshape(res_dim, 1))
    rw = jnp.stack(rw)                            # (2*depth, C, 9C)
    rb = jnp.stack(rb)                            # (2*depth, C, 1)

    # BatchNorm2d (inference) default stats: gamma=1, beta=0, mean=0, var=1.
    gamma = jnp.ones((n_conv, res_dim, 1), jnp.float32)
    beta = jnp.zeros((n_conv, res_dim, 1), jnp.float32)
    mean = jnp.zeros((n_conv, res_dim, 1), jnp.float32)
    var = jnp.ones((n_conv, res_dim, 1), jnp.float32)
    rscale = gamma / jnp.sqrt(var + eps)
    rshift = beta - mean * rscale
    return {"cs_w": cs_w, "cs_b": cs_b, "rw": rw, "rb": rb,
            "rscale": rscale, "rshift": rshift}


# ---------------------------------------------------------------------------
# Pure-JAX reference (independent conv path) for validation
# ---------------------------------------------------------------------------

def _reference_forward(params, ego_feature, cav_feature):
    _, h, w = ego_feature.shape
    N, Cin, Hin, Win = cav_feature.shape
    C = params["cs_w"].shape[0]
    depth = params["rw"].shape[0] // 2

    cs = (jnp.einsum("oc,nchw->nohw", params["cs_w"], cav_feature)
          + params["cs_b"].reshape(1, C, 1, 1))
    ah = jnp.asarray(_resize_matrix(Hin, h))
    aw = jnp.asarray(_resize_matrix(Win, w))
    resized = jnp.einsum("hp,ncpq,wq->nchw", ah, cs, aw)

    cur = resized
    for d in range(depth):
        z = cur
        for j, lrelu in ((0, True), (1, False)):
            k = 2 * d + j
            wk = params["rw"][k].reshape(C, 3, 3, C).transpose(0, 3, 1, 2)  # (O,I,3,3)
            z = lax.conv_general_dilated(
                z, wk, window_strides=(1, 1), padding=((1, 1), (1, 1)),
                dimension_numbers=("NCHW", "OIHW", "NCHW"))
            z = z + params["rb"][k].reshape(1, C, 1, 1)
            z = (z * params["rscale"][k].reshape(1, C, 1, 1)
                 + params["rshift"][k].reshape(1, C, 1, 1))
            if lrelu:
                z = jnp.where(z > 0, z, 0.01 * z)
        cur = cur + z
    return resized + (cur + resized)


# ---------------------------------------------------------------------------
# Main
# ---------------------------------------------------------------------------

if __name__ == "__main__":
    # args: input_channel=8, output_channel=4, residual depth=2, residual input_dim=4
    INPUT_CHANNEL, OUTPUT_CHANNEL = 8, 4
    RES_DEPTH, RES_DIM = 2, 4

    key = jax.random.PRNGKey(0)
    k_param, k_ego, k_cav = jax.random.split(key, 3)

    params = init_params(k_param, INPUT_CHANNEL, OUTPUT_CHANNEL, RES_DEPTH, RES_DIM)

    ego_feature = jax.random.normal(k_ego, (OUTPUT_CHANNEL, 16, 16), jnp.float32)    # (C, h, w)
    cav_feature = jax.random.normal(k_cav, (2, INPUT_CHANNEL, 10, 12), jnp.float32)  # (N, C, H, W)

    out = learnable_resizer_forward(params, ego_feature, cav_feature)
    out = jax.block_until_ready(out)
    assert out.shape == (2, OUTPUT_CHANNEL, 16, 16), out.shape
    assert bool(jnp.all(jnp.isfinite(out)))

    ref = _reference_forward(params, ego_feature, cav_feature)
    assert bool(jnp.allclose(out, ref, atol=3e-2, rtol=3e-2)), (
        float(jnp.max(jnp.abs(out - ref))))

    print("KERNEL_OK")
</pallas_src>

<mosaic_0001>
module attributes {stable_mosaic.version = 11 : i64} {
  func.func @_fused_kernel(%arg0: i32, %arg1: memref<1x8x120xf32, #tpu.memory_space<vmem>>, %arg2: memref<4x8xf32, #tpu.memory_space<vmem>>, %arg3: memref<4x1xf32, #tpu.memory_space<vmem>>, %arg4: memref<120x256xf32, #tpu.memory_space<vmem>>, %arg5: memref<2x256xf32, #tpu.memory_space<vmem>>, %arg6: memref<4x4x36xf32, #tpu.memory_space<vmem>>, %arg7: memref<4x4x1xf32, #tpu.memory_space<vmem>>, %arg8: memref<1x4x256xf32, #tpu.memory_space<vmem>>) attributes {dimension_semantics = [#tpu.dimension_semantics<parallel>], iteration_bounds = array<i64: 2>, scalar_prefetch = 0 : i64, scratch_operands = 0 : i64, tpu.core_type = #tpu.core_type<tc>, window_params = [{transform_indices = @transform_0, window_bounds = array<i64: 1, 8, 120>}, {pipeline_mode = #tpu.pipeline_mode<synchronous>, transform_indices = @transform_1, window_bounds = array<i64: 4, 8>}, {pipeline_mode = #tpu.pipeline_mode<synchronous>, transform_indices = @transform_2, window_bounds = array<i64: 4, 1>}, {pipeline_mode = #tpu.pipeline_mode<synchronous>, transform_indices = @transform_3, window_bounds = array<i64: 120, 256>}, {pipeline_mode = #tpu.pipeline_mode<synchronous>, transform_indices = @transform_4, window_bounds = array<i64: 2, 256>}, {pipeline_mode = #tpu.pipeline_mode<synchronous>, transform_indices = @transform_5, window_bounds = array<i64: 4, 4, 36>}, {pipeline_mode = #tpu.pipeline_mode<synchronous>, transform_indices = @transform_6, window_bounds = array<i64: 4, 4, 1>}, {transform_indices = @transform_7, window_bounds = array<i64: 1, 4, 256>}]} {
    %c0 = arith.constant 0 : index
    %c0_0 = arith.constant 0 : index
    %c0_1 = arith.constant 0 : index
    %0 = vector.load %arg1[%c0, %c0_0, %c0_1] : memref<1x8x120xf32, #tpu.memory_space<vmem>>, vector<1x8x120xf32>
    %1 = vector.shape_cast %0 : vector<1x8x120xf32> to vector<8x120xf32>
    %c0_2 = arith.constant 0 : index
    %c0_3 = arith.constant 0 : index
    %2 = vector.load %arg2[%c0_2, %c0_3] : memref<4x8xf32, #tpu.memory_space<vmem>>, vector<4x8xf32>
    %cst = arith.constant dense<0.000000e+00> : vector<4x120xf32>
    %3 = tpu.matmul %2, %1, %cst {dimension_numbers = #tpu.dot_dimension_numbers<[1], [0], [0], [1], [0, 0, 1, 1], [], []>} : vector<4x8xf32>, vector<8x120xf32>, vector<4x120xf32> -> vector<4x120xf32>
    %c0_4 = arith.constant 0 : index
    %c0_5 = arith.constant 0 : index
    %4 = vector.load %arg3[%c0_4, %c0_5] : memref<4x1xf32, #tpu.memory_space<vmem>>, vector<4x1xf32>
    %5 = vector.broadcast %4 : vector<4x1xf32> to vector<4x120xf32>
    %6 = arith.addf %3, %5 : vector<4x120xf32>
    %c0_6 = arith.constant 0 : index
    %c0_7 = arith.constant 0 : index
    %7 = vector.load %arg4[%c0_6, %c0_7] : memref<120x256xf32, #tpu.memory_space<vmem>>, vector<120x256xf32>
    %cst_8 = arith.constant dense<0.000000e+00> : vector<4x256xf32>
    %8 = tpu.matmul %6, %7, %cst_8 {dimension_numbers = #tpu.dot_dimension_numbers<[1], [0], [0], [1], [0, 0, 1, 1], [], []>} : vector<4x120xf32>, vector<120x256xf32>, vector<4x256xf32> -> vector<4x256xf32>
    %c0_9 = arith.constant 0 : index
    %c0_10 = arith.constant 0 : index
    %9 = vector.load %arg5[%c0_9, %c0_10] : memref<2x256xf32, #tpu.memory_space<vmem>>, vector<1x256xf32>
    %c1 = arith.constant 1 : index
    %c0_11 = arith.constant 0 : index
    %10 = vector.load %arg5[%c1, %c0_11] : memref<2x256xf32, #tpu.memory_space<vmem>>, vector<1x256xf32>
    %cst_12 = arith.constant 0.000000e+00 : f32
    %11 = vector.broadcast %cst_12 : f32 to vector<4x17xf32>
    %c0_13 = arith.constant 0 : index
    %c0_14 = arith.constant 0 : index
    %c0_15 = arith.constant 0 : index
    %12 = vector.load %arg6[%c0_13, %c0_14, %c0_15] : memref<4x4x36xf32, #tpu.memory_space<vmem>>, vector<1x4x36xf32>
    %13 = vector.shape_cast %12 : vector<1x4x36xf32> to vector<4x36xf32>
    %c0_16 = arith.constant 0 : index
    %c0_17 = arith.constant 0 : index
    %c0_18 = arith.constant 0 : index
    %14 = vector.load %arg7[%c0_16, %c0_17, %c0_18] : memref<4x4x1xf32, #tpu.memory_space<vmem>>, vector<1x4x1xf32>
    %15 = vector.shape_cast %14 : vector<1x4x1xf32> to vector<4x1xf32>
    %16 = tpu.concatenate %11, %8, %11 in 1 : vector<4x17xf32>, vector<4x256xf32>, vector<4x17xf32> -> vector<4x290xf32>
    %cst_19 = arith.constant 0.000000e+00 : f32
    %17 = vector.broadcast %cst_19 : f32 to vector<4x256xf32>
    %cst_20 = arith.constant 0.000000e+00 : f32
    %18 = vector.broadcast %cst_20 : f32 to vector<4x256xf32>
    %cst_21 = arith.constant 0.000000e+00 : f32
    %19 = vector.broadcast %cst_21 : f32 to vector<4x256xf32>
    %20 = vector.extract_strided_slice %16 {offsets = [0, 0], sizes = [4, 256], strides = [1, 1]} : vector<4x290xf32> to vector<4x256xf32>
    %21 = vector.extract_strided_slice %13 {offsets = [0, 0], sizes = [4, 4], strides = [1, 1]} : vector<4x36xf32> to vector<4x4xf32>
    %cst_22 = arith.constant dense<0.000000e+00> : vector<4x256xf32>
    %22 = tpu.matmul %21, %20, %cst_22 {dimension_numbers = #tpu.dot_dimension_numbers<[1], [0], [0], [1], [0, 0, 1, 1], [], []>} : vector<4x4xf32>, vector<4x256xf32>, vector<4x256xf32> -> vector<4x256xf32>
    %23 = arith.addf %18, %22 : vector<4x256xf32>
    %24 = vector.extract_strided_slice %16 {offsets = [0, 1], sizes = [4, 256], strides = [1, 1]} : vector<4x290xf32> to vector<4x256xf32>
    %25 = vector.extract_strided_slice %13 {offsets = [0, 4], sizes = [4, 4], strides = [1, 1]} : vector<4x36xf32> to vector<4x4xf32>
    %cst_23 = arith.constant dense<0.000000e+00> : vector<4x256xf32>
    %26 = tpu.matmul %25, %24, %cst_23 {dimension_numbers = #tpu.dot_dimension_numbers<[1], [0], [0], [1], [0, 0, 1, 1], [], []>} : vector<4x4xf32>, vector<4x256xf32>, vector<4x256xf32> -> vector<4x256xf32>
    %27 = arith.addf %17, %26 : vector<4x256xf32>
    %28 = vector.extract_strided_slice %16 {offsets = [0, 2], sizes = [4, 256], strides = [1, 1]} : vector<4x290xf32> to vector<4x256xf32>
    %29 = vector.extract_strided_slice %13 {offsets = [0, 8], sizes = [4, 4], strides = [1, 1]} : vector<4x36xf32> to vector<4x4xf32>
    %cst_24 = arith.constant dense<0.000000e+00> : vector<4x256xf32>
    %30 = tpu.matmul %29, %28, %cst_24 {dimension_numbers = #tpu.dot_dimension_numbers<[1], [0], [0], [1], [0, 0, 1, 1], [], []>} : vector<4x4xf32>, vector<4x256xf32>, vector<4x256xf32> -> vector<4x256xf32>
    %31 = arith.addf %19, %30 : vector<4x256xf32>
    %32 = vector.extract_strided_slice %16 {offsets = [0, 16], sizes = [4, 256], strides = [1, 1]} : vector<4x290xf32> to vector<4x256xf32>
    %33 = vector.extract_strided_slice %13 {offsets = [0, 12], sizes = [4, 4], strides = [1, 1]} : vector<4x36xf32> to vector<4x4xf32>
    %cst_25 = arith.constant dense<0.000000e+00> : vector<4x256xf32>
    %34 = tpu.matmul %33, %32, %cst_25 {dimension_numbers = #tpu.dot_dimension_numbers<[1], [0], [0], [1], [0, 0, 1, 1], [], []>} : vector<4x4xf32>, vector<4x256xf32>, vector<4x256xf32> -> vector<4x256xf32>
    %35 = arith.addf %23, %34 : vector<4x256xf32>
    %36 = vector.extract_strided_slice %16 {offsets = [0, 17], sizes = [4, 256], strides = [1, 1]} : vector<4x290xf32> to vector<4x256xf32>
    %37 = vector.extract_strided_slice %13 {offsets = [0, 16], sizes = [4, 4], strides = [1, 1]} : vector<4x36xf32> to vector<4x4xf32>
    %cst_26 = arith.constant dense<0.000000e+00> : vector<4x256xf32>
    %38 = tpu.matmul %37, %36, %cst_26 {dimension_numbers = #tpu.dot_dimension_numbers<[1], [0], [0], [1], [0, 0, 1, 1], [], []>} : vector<4x4xf32>, vector<4x256xf32>, vector<4x256xf32> -> vector<4x256xf32>
    %39 = arith.addf %27, %38 : vector<4x256xf32>
    %40 = vector.extract_strided_slice %16 {offsets = [0, 18], sizes = [4, 256], strides = [1, 1]} : vector<4x290xf32> to vector<4x256xf32>
    %41 = vector.extract_strided_slice %13 {offsets = [0, 20], sizes = [4, 4], strides = [1, 1]} : vector<4x36xf32> to vector<4x4xf32>
    %cst_27 = arith.constant dense<0.000000e+00> : vector<4x256xf32>
    %42 = tpu.matmul %41, %40, %cst_27 {dimension_numbers = #tpu.dot_dimension_numbers<[1], [0], [0], [1], [0, 0, 1, 1], [], []>} : vector<4x4xf32>, vector<4x256xf32>, vector<4x256xf32> -> vector<4x256xf32>
    %43 = arith.addf %31, %42 : vector<4x256xf32>
    %44 = vector.extract_strided_slice %16 {offsets = [0, 32], sizes = [4, 256], strides = [1, 1]} : vector<4x290xf32> to vector<4x256xf32>
    %45 = vector.extract_strided_slice %13 {offsets = [0, 24], sizes = [4, 4], strides = [1, 1]} : vector<4x36xf32> to vector<4x4xf32>
    %cst_28 = arith.constant dense<0.000000e+00> : vector<4x256xf32>
    %46 = tpu.matmul %45, %44, %cst_28 {dimension_numbers = #tpu.dot_dimension_numbers<[1], [0], [0], [1], [0, 0, 1, 1], [], []>} : vector<4x4xf32>, vector<4x256xf32>, vector<4x256xf32> -> vector<4x256xf32>
    %47 = arith.addf %35, %46 : vector<4x256xf32>
    %48 = vector.extract_strided_slice %16 {offsets = [0, 33], sizes = [4, 256], strides = [1, 1]} : vector<4x290xf32> to vector<4x256xf32>
    %49 = vector.extract_strided_slice %13 {offsets = [0, 28], sizes = [4, 4], strides = [1, 1]} : vector<4x36xf32> to vector<4x4xf32>
    %cst_29 = arith.constant dense<0.000000e+00> : vector<4x256xf32>
    %50 = tpu.matmul %49, %48, %cst_29 {dimension_numbers = #tpu.dot_dimension_numbers<[1], [0], [0], [1], [0, 0, 1, 1], [], []>} : vector<4x4xf32>, vector<4x256xf32>, vector<4x256xf32> -> vector<4x256xf32>
    %51 = arith.addf %39, %50 : vector<4x256xf32>
    %52 = vector.extract_strided_slice %16 {offsets = [0, 34], sizes = [4, 256], strides = [1, 1]} : vector<4x290xf32> to vector<4x256xf32>
    %53 = vector.extract_strided_slice %13 {offsets = [0, 32], sizes = [4, 4], strides = [1, 1]} : vector<4x36xf32> to vector<4x4xf32>
    %cst_30 = arith.constant dense<0.000000e+00> : vector<4x256xf32>
    %54 = tpu.matmul %53, %52, %cst_30 {dimension_numbers = #tpu.dot_dimension_numbers<[1], [0], [0], [1], [0, 0, 1, 1], [], []>} : vector<4x4xf32>, vector<4x256xf32>, vector<4x256xf32> -> vector<4x256xf32>
    %55 = arith.addf %43, %54 : vector<4x256xf32>
    %56 = vector.broadcast %9 : vector<1x256xf32> to vector<4x256xf32>
    %57 = arith.mulf %47, %56 : vector<4x256xf32>
    %58 = arith.addf %51, %57 : vector<4x256xf32>
    %59 = vector.broadcast %10 : vector<1x256xf32> to vector<4x256xf32>
    %60 = arith.mulf %55, %59 : vector<4x256xf32>
    %61 = arith.addf %58, %60 : vector<4x256xf32>
    %62 = vector.broadcast %15 : vector<4x1xf32> to vector<4x256xf32>
    %63 = arith.addf %61, %62 : vector<4x256xf32>
    %cst_31 = arith.constant 0.000000e+00 : f32
    %64 = vector.broadcast %cst_31 : f32 to vector<4x256xf32>
    %65 = arith.cmpf ogt, %63, %64 : vector<4x256xf32>
    %cst_32 = arith.constant 0.00999999977 : f32
    %66 = vector.broadcast %cst_32 : f32 to vector<4x256xf32>
    %67 = arith.mulf %66, %63 : vector<4x256xf32>
    %68 = arith.select %65, %63, %67 : vector<4x256xi1>, vector<4x256xf32>
    %c1_33 = arith.constant 1 : index
    %c0_34 = arith.constant 0 : index
    %c0_35 = arith.constant 0 : index
    %69 = vector.load %arg6[%c1_33, %c0_34, %c0_35] : memref<4x4x36xf32, #tpu.memory_space<vmem>>, vector<1x4x36xf32>
    %70 = vector.shape_cast %69 : vector<1x4x36xf32> to vector<4x36xf32>
    %c1_36 = arith.constant 1 : index
    %c0_37 = arith.constant 0 : index
    %c0_38 = arith.constant 0 : index
    %71 = vector.load %arg7[%c1_36, %c0_37, %c0_38] : memref<4x4x1xf32, #tpu.memory_space<vmem>>, vector<1x4x1xf32>
    %72 = vector.shape_cast %71 : vector<1x4x1xf32> to vector<4x1xf32>
    %73 = tpu.concatenate %11, %68, %11 in 1 : vector<4x17xf32>, vector<4x256xf32>, vector<4x17xf32> -> vector<4x290xf32>
    %cst_39 = arith.constant 0.000000e+00 : f32
    %74 = vector.broadcast %cst_39 : f32 to vector<4x256xf32>
    %cst_40 = arith.constant 0.000000e+00 : f32
    %75 = vector.broadcast %cst_40 : f32 to vector<4x256xf32>
    %cst_41 = arith.constant 0.000000e+00 : f32
    %76 = vector.broadcast %cst_41 : f32 to vector<4x256xf32>
    %77 = vector.extract_strided_slice %73 {offsets = [0, 0], sizes = [4, 256], strides = [1, 1]} : vector<4x290xf32> to vector<4x256xf32>
    %78 = vector.extract_strided_slice %70 {offsets = [0, 0], sizes = [4, 4], strides = [1, 1]} : vector<4x36xf32> to vector<4x4xf32>
    %cst_42 = arith.constant dense<0.000000e+00> : vector<4x256xf32>
    %79 = tpu.matmul %78, %77, %cst_42 {dimension_numbers = #tpu.dot_dimension_numbers<[1], [0], [0], [1], [0, 0, 1, 1], [], []>} : vector<4x4xf32>, vector<4x256xf32>, vector<4x256xf32> -> vector<4x256xf32>
    %80 = arith.addf %75, %79 : vector<4x256xf32>
    %81 = vector.extract_strided_slice %73 {offsets = [0, 1], sizes = [4, 256], strides = [1, 1]} : vector<4x290xf32> to vector<4x256xf32>
    %82 = vector.extract_strided_slice %70 {offsets = [0, 4], sizes = [4, 4], strides = [1, 1]} : vector<4x36xf32> to vector<4x4xf32>
    %cst_43 = arith.constant dense<0.000000e+00> : vector<4x256xf32>
    %83 = tpu.matmul %82, %81, %cst_43 {dimension_numbers = #tpu.dot_dimension_numbers<[1], [0], [0], [1], [0, 0, 1, 1], [], []>} : vector<4x4xf32>, vector<4x256xf32>, vector<4x256xf32> -> vector<4x256xf32>
    %84 = arith.addf %74, %83 : vector<4x256xf32>
    %85 = vector.extract_strided_slice %73 {offsets = [0, 2], sizes = [4, 256], strides = [1, 1]} : vector<4x290xf32> to vector<4x256xf32>
    %86 = vector.extract_strided_slice %70 {offsets = [0, 8], sizes = [4, 4], strides = [1, 1]} : vector<4x36xf32> to vector<4x4xf32>
    %cst_44 = arith.constant dense<0.000000e+00> : vector<4x256xf32>
    %87 = tpu.matmul %86, %85, %cst_44 {dimension_numbers = #tpu.dot_dimension_numbers<[1], [0], [0], [1], [0, 0, 1, 1], [], []>} : vector<4x4xf32>, vector<4x256xf32>, vector<4x256xf32> -> vector<4x256xf32>
    %88 = arith.addf %76, %87 : vector<4x256xf32>
    %89 = vector.extract_strided_slice %73 {offsets = [0, 16], sizes = [4, 256], strides = [1, 1]} : vector<4x290xf32> to vector<4x256xf32>
    %90 = vector.extract_strided_slice %70 {offsets = [0, 12], sizes = [4, 4], strides = [1, 1]} : vector<4x36xf32> to vector<4x4xf32>
    %cst_45 = arith.constant dense<0.000000e+00> : vector<4x256xf32>
    %91 = tpu.matmul %90, %89, %cst_45 {dimension_numbers = #tpu.dot_dimension_numbers<[1], [0], [0], [1], [0, 0, 1, 1], [], []>} : vector<4x4xf32>, vector<4x256xf32>, vector<4x256xf32> -> vector<4x256xf32>
    %92 = arith.addf %80, %91 : vector<4x256xf32>
    %93 = vector.extract_strided_slice %73 {offsets = [0, 17], sizes = [4, 256], strides = [1, 1]} : vector<4x290xf32> to vector<4x256xf32>
    %94 = vector.extract_strided_slice %70 {offsets = [0, 16], sizes = [4, 4], strides = [1, 1]} : vector<4x36xf32> to vector<4x4xf32>
    %cst_46 = arith.constant dense<0.000000e+00> : vector<4x256xf32>
    %95 = tpu.matmul %94, %93, %cst_46 {dimension_numbers = #tpu.dot_dimension_numbers<[1], [0], [0], [1], [0, 0, 1, 1], [], []>} : vector<4x4xf32>, vector<4x256xf32>, vector<4x256xf32> -> vector<4x256xf32>
    %96 = arith.addf %84, %95 : vector<4x256xf32>
    %97 = vector.extract_strided_slice %73 {offsets = [0, 18], sizes = [4, 256], strides = [1, 1]} : vector<4x290xf32> to vector<4x256xf32>
    %98 = vector.extract_strided_slice %70 {offsets = [0, 20], sizes = [4, 4], strides = [1, 1]} : vector<4x36xf32> to vector<4x4xf32>
    %cst_47 = arith.constant dense<0.000000e+00> : vector<4x256xf32>
    %99 = tpu.matmul %98, %97, %cst_47 {dimension_numbers = #tpu.dot_dimension_numbers<[1], [0], [0], [1], [0, 0, 1, 1], [], []>} : vector<4x4xf32>, vector<4x256xf32>, vector<4x256xf32> -> vector<4x256xf32>
    %100 = arith.addf %88, %99 : vector<4x256xf32>
    %101 = vector.extract_strided_slice %73 {offsets = [0, 32], sizes = [4, 256], strides = [1, 1]} : vector<4x290xf32> to vector<4x256xf32>
    %102 = vector.extract_strided_slice %70 {offsets = [0, 24], sizes = [4, 4], strides = [1, 1]} : vector<4x36xf32> to vector<4x4xf32>
    %cst_48 = arith.constant dense<0.000000e+00> : vector<4x256xf32>
    %103 = tpu.matmul %102, %101, %cst_48 {dimension_numbers = #tpu.dot_dimension_numbers<[1], [0], [0], [1], [0, 0, 1, 1], [], []>} : vector<4x4xf32>, vector<4x256xf32>, vector<4x256xf32> -> vector<4x256xf32>
    %104 = arith.addf %92, %103 : vector<4x256xf32>
    %105 = vector.extract_strided_slice %73 {offsets = [0, 33], sizes = [4, 256], strides = [1, 1]} : vector<4x290xf32> to vector<4x256xf32>
    %106 = vector.extract_strided_slice %70 {offsets = [0, 28], sizes = [4, 4], strides = [1, 1]} : vector<4x36xf32> to vector<4x4xf32>
    %cst_49 = arith.constant dense<0.000000e+00> : vector<4x256xf32>
    %107 = tpu.matmul %106, %105, %cst_49 {dimension_numbers = #tpu.dot_dimension_numbers<[1], [0], [0], [1], [0, 0, 1, 1], [], []>} : vector<4x4xf32>, vector<4x256xf32>, vector<4x256xf32> -> vector<4x256xf32>
    %108 = arith.addf %96, %107 : vector<4x256xf32>
    %109 = vector.extract_strided_slice %73 {offsets = [0, 34], sizes = [4, 256], strides = [1, 1]} : vector<4x290xf32> to vector<4x256xf32>
    %110 = vector.extract_strided_slice %70 {offsets = [0, 32], sizes = [4, 4], strides = [1, 1]} : vector<4x36xf32> to vector<4x4xf32>
    %cst_50 = arith.constant dense<0.000000e+00> : vector<4x256xf32>
    %111 = tpu.matmul %110, %109, %cst_50 {dimension_numbers = #tpu.dot_dimension_numbers<[1], [0], [0], [1], [0, 0, 1, 1], [], []>} : vector<4x4xf32>, vector<4x256xf32>, vector<4x256xf32> -> vector<4x256xf32>
    %112 = arith.addf %100, %111 : vector<4x256xf32>
    %113 = vector.broadcast %9 : vector<1x256xf32> to vector<4x256xf32>
    %114 = arith.mulf %104, %113 : vector<4x256xf32>
    %115 = arith.addf %108, %114 : vector<4x256xf32>
    %116 = vector.broadcast %10 : vector<1x256xf32> to vector<4x256xf32>
    %117 = arith.mulf %112, %116 : vector<4x256xf32>
    %118 = arith.addf %115, %117 : vector<4x256xf32>
    %119 = vector.broadcast %72 : vector<4x1xf32> to vector<4x256xf32>
    %120 = arith.addf %118, %119 : vector<4x256xf32>
    %121 = arith.addf %8, %120 : vector<4x256xf32>
    %c2 = arith.constant 2 : index
    %c0_51 = arith.constant 0 : index
    %c0_52 = arith.constant 0 : index
    %122 = vector.load %arg6[%c2, %c0_51, %c0_52] : memref<4x4x36xf32, #tpu.memory_space<vmem>>, vector<1x4x36xf32>
    %123 = vector.shape_cast %122 : vector<1x4x36xf32> to vector<4x36xf32>
    %c2_53 = arith.constant 2 : index
    %c0_54 = arith.constant 0 : index
    %c0_55 = arith.constant 0 : index
    %124 = vector.load %arg7[%c2_53, %c0_54, %c0_55] : memref<4x4x1xf32, #tpu.memory_space<vmem>>, vector<1x4x1xf32>
    %125 = vector.shape_cast %124 : vector<1x4x1xf32> to vector<4x1xf32>
    %126 = tpu.concatenate %11, %121, %11 in 1 : vector<4x17xf32>, vector<4x256xf32>, vector<4x17xf32> -> vector<4x290xf32>
    %cst_56 = arith.constant 0.000000e+00 : f32
    %127 = vector.broadcast %cst_56 : f32 to vector<4x256xf32>
    %cst_57 = arith.constant 0.000000e+00 : f32
    %128 = vector.broadcast %cst_57 : f32 to vector<4x256xf32>
    %cst_58 = arith.constant 0.000000e+00 : f32
    %129 = vector.broadcast %cst_58 : f32 to vector<4x256xf32>
    %130 = vector.extract_strided_slice %126 {offsets = [0, 0], sizes = [4, 256], strides = [1, 1]} : vector<4x290xf32> to vector<4x256xf32>
    %131 = vector.extract_strided_slice %123 {offsets = [0, 0], sizes = [4, 4], strides = [1, 1]} : vector<4x36xf32> to vector<4x4xf32>
    %cst_59 = arith.constant dense<0.000000e+00> : vector<4x256xf32>
    %132 = tpu.matmul %131, %130, %cst_59 {dimension_numbers = #tpu.dot_dimension_numbers<[1], [0], [0], [1], [0, 0, 1, 1], [], []>} : vector<4x4xf32>, vector<4x256xf32>, vector<4x256xf32> -> vector<4x256xf32>
    %133 = arith.addf %128, %132 : vector<4x256xf32>
    %134 = vector.extract_strided_slice %126 {offsets = [0, 1], sizes = [4, 256], strides = [1, 1]} : vector<4x290xf32> to vector<4x256xf32>
    %135 = vector.extract_strided_slice %123 {offsets = [0, 4], sizes = [4, 4], strides = [1, 1]} : vector<4x36xf32> to vector<4x4xf32>
    %cst_60 = arith.constant dense<0.000000e+00> : vector<4x256xf32>
    %136 = tpu.matmul %135, %134, %cst_60 {dimension_numbers = #tpu.dot_dimension_numbers<[1], [0], [0], [1], [0, 0, 1, 1], [], []>} : vector<4x4xf32>, vector<4x256xf32>, vector<4x256xf32> -> vector<4x256xf32>
    %137 = arith.addf %127, %136 : vector<4x256xf32>
    %138 = vector.extract_strided_slice %126 {offsets = [0, 2], sizes = [4, 256], strides = [1, 1]} : vector<4x290xf32> to vector<4x256xf32>
    %139 = vector.extract_strided_slice %123 {offsets = [0, 8], sizes = [4, 4], strides = [1, 1]} : vector<4x36xf32> to vector<4x4xf32>
    %cst_61 = arith.constant dense<0.000000e+00> : vector<4x256xf32>
    %140 = tpu.matmul %139, %138, %cst_61 {dimension_numbers = #tpu.dot_dimension_numbers<[1], [0], [0], [1], [0, 0, 1, 1], [], []>} : vector<4x4xf32>, vector<4x256xf32>, vector<4x256xf32> -> vector<4x256xf32>
    %141 = arith.addf %129, %140 : vector<4x256xf32>
    %142 = vector.extract_strided_slice %126 {offsets = [0, 16], sizes = [4, 256], strides = [1, 1]} : vector<4x290xf32> to vector<4x256xf32>
    %143 = vector.extract_strided_slice %123 {offsets = [0, 12], sizes = [4, 4], strides = [1, 1]} : vector<4x36xf32> to vector<4x4xf32>
    %cst_62 = arith.constant dense<0.000000e+00> : vector<4x256xf32>
    %144 = tpu.matmul %143, %142, %cst_62 {dimension_numbers = #tpu.dot_dimension_numbers<[1], [0], [0], [1], [0, 0, 1, 1], [], []>} : vector<4x4xf32>, vector<4x256xf32>, vector<4x256xf32> -> vector<4x256xf32>
    %145 = arith.addf %133, %144 : vector<4x256xf32>
    %146 = vector.extract_strided_slice %126 {offsets = [0, 17], sizes = [4, 256], strides = [1, 1]} : vector<4x290xf32> to vector<4x256xf32>
    %147 = vector.extract_strided_slice %123 {offsets = [0, 16], sizes = [4, 4], strides = [1, 1]} : vector<4x36xf32> to vector<4x4xf32>
    %cst_63 = arith.constant dense<0.000000e+00> : vector<4x256xf32>
    %148 = tpu.matmul %147, %146, %cst_63 {dimension_numbers = #tpu.dot_dimension_numbers<[1], [0], [0], [1], [0, 0, 1, 1], [], []>} : vector<4x4xf32>, vector<4x256xf32>, vector<4x256xf32> -> vector<4x256xf32>
    %149 = arith.addf %137, %148 : vector<4x256xf32>
    %150 = vector.extract_strided_slice %126 {offsets = [0, 18], sizes = [4, 256], strides = [1, 1]} : vector<4x290xf32> to vector<4x256xf32>
    %151 = vector.extract_strided_slice %123 {offsets = [0, 20], sizes = [4, 4], strides = [1, 1]} : vector<4x36xf32> to vector<4x4xf32>
    %cst_64 = arith.constant dense<0.000000e+00> : vector<4x256xf32>
    %152 = tpu.matmul %151, %150, %cst_64 {dimension_numbers = #tpu.dot_dimension_numbers<[1], [0], [0], [1], [0, 0, 1, 1], [], []>} : vector<4x4xf32>, vector<4x256xf32>, vector<4x256xf32> -> vector<4x256xf32>
    %153 = arith.addf %141, %152 : vector<4x256xf32>
    %154 = vector.extract_strided_slice %126 {offsets = [0, 32], sizes = [4, 256], strides = [1, 1]} : vector<4x290xf32> to vector<4x256xf32>
    %155 = vector.extract_strided_slice %123 {offsets = [0, 24], sizes = [4, 4], strides = [1, 1]} : vector<4x36xf32> to vector<4x4xf32>
    %cst_65 = arith.constant dense<0.000000e+00> : vector<4x256xf32>
    %156 = tpu.matmul %155, %154, %cst_65 {dimension_numbers = #tpu.dot_dimension_numbers<[1], [0], [0], [1], [0, 0, 1, 1], [], []>} : vector<4x4xf32>, vector<4x256xf32>, vector<4x256xf32> -> vector<4x256xf32>
    %157 = arith.addf %145, %156 : vector<4x256xf32>
    %158 = vector.extract_strided_slice %126 {offsets = [0, 33], sizes = [4, 256], strides = [1, 1]} : vector<4x290xf32> to vector<4x256xf32>
    %159 = vector.extract_strided_slice %123 {offsets = [0, 28], sizes = [4, 4], strides = [1, 1]} : vector<4x36xf32> to vector<4x4xf32>
    %cst_66 = arith.constant dense<0.000000e+00> : vector<4x256xf32>
    %160 = tpu.matmul %159, %158, %cst_66 {dimension_numbers = #tpu.dot_dimension_numbers<[1], [0], [0], [1], [0, 0, 1, 1], [], []>} : vector<4x4xf32>, vector<4x256xf32>, vector<4x256xf32> -> vector<4x256xf32>
    %161 = arith.addf %149, %160 : vector<4x256xf32>
    %162 = vector.extract_strided_slice %126 {offsets = [0, 34], sizes = [4, 256], strides = [1, 1]} : vector<4x290xf32> to vector<4x256xf32>
    %163 = vector.extract_strided_slice %123 {offsets = [0, 32], sizes = [4, 4], strides = [1, 1]} : vector<4x36xf32> to vector<4x4xf32>
    %cst_67 = arith.constant dense<0.000000e+00> : vector<4x256xf32>
    %164 = tpu.matmul %163, %162, %cst_67 {dimension_numbers = #tpu.dot_dimension_numbers<[1], [0], [0], [1], [0, 0, 1, 1], [], []>} : vector<4x4xf32>, vector<4x256xf32>, vector<4x256xf32> -> vector<4x256xf32>
    %165 = arith.addf %153, %164 : vector<4x256xf32>
    %166 = vector.broadcast %9 : vector<1x256xf32> to vector<4x256xf32>
    %167 = arith.mulf %157, %166 : vector<4x256xf32>
    %168 = arith.addf %161, %167 : vector<4x256xf32>
    %169 = vector.broadcast %10 : vector<1x256xf32> to vector<4x256xf32>
    %170 = arith.mulf %165, %169 : vector<4x256xf32>
    %171 = arith.addf %168, %170 : vector<4x256xf32>
    %172 = vector.broadcast %125 : vector<4x1xf32> to vector<4x256xf32>
    %173 = arith.addf %171, %172 : vector<4x256xf32>
    %cst_68 = arith.constant 0.000000e+00 : f32
    %174 = vector.broadcast %cst_68 : f32 to vector<4x256xf32>
    %175 = arith.cmpf ogt, %173, %174 : vector<4x256xf32>
    %cst_69 = arith.constant 0.00999999977 : f32
    %176 = vector.broadcast %cst_69 : f32 to vector<4x256xf32>
    %177 = arith.mulf %176, %173 : vector<4x256xf32>
    %178 = arith.select %175, %173, %177 : vector<4x256xi1>, vector<4x256xf32>
    %c3 = arith.constant 3 : index
    %c0_70 = arith.constant 0 : index
    %c0_71 = arith.constant 0 : index
    %179 = vector.load %arg6[%c3, %c0_70, %c0_71] : memref<4x4x36xf32, #tpu.memory_space<vmem>>, vector<1x4x36xf32>
    %180 = vector.shape_cast %179 : vector<1x4x36xf32> to vector<4x36xf32>
    %c3_72 = arith.constant 3 : index
    %c0_73 = arith.constant 0 : index
    %c0_74 = arith.constant 0 : index
    %181 = vector.load %arg7[%c3_72, %c0_73, %c0_74] : memref<4x4x1xf32, #tpu.memory_space<vmem>>, vector<1x4x1xf32>
    %182 = vector.shape_cast %181 : vector<1x4x1xf32> to vector<4x1xf32>
    %183 = tpu.concatenate %11, %178, %11 in 1 : vector<4x17xf32>, vector<4x256xf32>, vector<4x17xf32> -> vector<4x290xf32>
    %cst_75 = arith.constant 0.000000e+00 : f32
    %184 = vector.broadcast %cst_75 : f32 to vector<4x256xf32>
    %cst_76 = arith.constant 0.000000e+00 : f32
    %185 = vector.broadcast %cst_76 : f32 to vector<4x256xf32>
    %cst_77 = arith.constant 0.000000e+00 : f32
    %186 = vector.broadcast %cst_77 : f32 to vector<4x256xf32>
    %187 = vector.extract_strided_slice %183 {offsets = [0, 0], sizes = [4, 256], strides = [1, 1]} : vector<4x290xf32> to vector<4x256xf32>
    %188 = vector.extract_strided_slice %180 {offsets = [0, 0], sizes = [4, 4], strides = [1, 1]} : vector<4x36xf32> to vector<4x4xf32>
    %cst_78 = arith.constant dense<0.000000e+00> : vector<4x256xf32>
    %189 = tpu.matmul %188, %187, %cst_78 {dimension_numbers = #tpu.dot_dimension_numbers<[1], [0], [0], [1], [0, 0, 1, 1], [], []>} : vector<4x4xf32>, vector<4x256xf32>, vector<4x256xf32> -> vector<4x256xf32>
    %190 = arith.addf %185, %189 : vector<4x256xf32>
    %191 = vector.extract_strided_slice %183 {offsets = [0, 1], sizes = [4, 256], strides = [1, 1]} : vector<4x290xf32> to vector<4x256xf32>
    %192 = vector.extract_strided_slice %180 {offsets = [0, 4], sizes = [4, 4], strides = [1, 1]} : vector<4x36xf32> to vector<4x4xf32>
    %cst_79 = arith.constant dense<0.000000e+00> : vector<4x256xf32>
    %193 = tpu.matmul %192, %191, %cst_79 {dimension_numbers = #tpu.dot_dimension_numbers<[1], [0], [0], [1], [0, 0, 1, 1], [], []>} : vector<4x4xf32>, vector<4x256xf32>, vector<4x256xf32> -> vector<4x256xf32>
    %194 = arith.addf %184, %193 : vector<4x256xf32>
    %195 = vector.extract_strided_slice %183 {offsets = [0, 2], sizes = [4, 256], strides = [1, 1]} : vector<4x290xf32> to vector<4x256xf32>
    %196 = vector.extract_strided_slice %180 {offsets = [0, 8], sizes = [4, 4], strides = [1, 1]} : vector<4x36xf32> to vector<4x4xf32>
    %cst_80 = arith.constant dense<0.000000e+00> : vector<4x256xf32>
    %197 = tpu.matmul %196, %195, %cst_80 {dimension_numbers = #tpu.dot_dimension_numbers<[1], [0], [0], [1], [0, 0, 1, 1], [], []>} : vector<4x4xf32>, vector<4x256xf32>, vector<4x256xf32> -> vector<4x256xf32>
    %198 = arith.addf %186, %197 : vector<4x256xf32>
    %199 = vector.extract_strided_slice %183 {offsets = [0, 16], sizes = [4, 256], strides = [1, 1]} : vector<4x290xf32> to vector<4x256xf32>
    %200 = vector.extract_strided_slice %180 {offsets = [0, 12], sizes = [4, 4], strides = [1, 1]} : vector<4x36xf32> to vector<4x4xf32>
    %cst_81 = arith.constant dense<0.000000e+00> : vector<4x256xf32>
    %201 = tpu.matmul %200, %199, %cst_81 {dimension_numbers = #tpu.dot_dimension_numbers<[1], [0], [0], [1], [0, 0, 1, 1], [], []>} : vector<4x4xf32>, vector<4x256xf32>, vector<4x256xf32> -> vector<4x256xf32>
    %202 = arith.addf %190, %201 : vector<4x256xf32>
    %203 = vector.extract_strided_slice %183 {offsets = [0, 17], sizes = [4, 256], strides = [1, 1]} : vector<4x290xf32> to vector<4x256xf32>
    %204 = vector.extract_strided_slice %180 {offsets = [0, 16], sizes = [4, 4], strides = [1, 1]} : vector<4x36xf32> to vector<4x4xf32>
    %cst_82 = arith.constant dense<0.000000e+00> : vector<4x256xf32>
    %205 = tpu.matmul %204, %203, %cst_82 {dimension_numbers = #tpu.dot_dimension_numbers<[1], [0], [0], [1], [0, 0, 1, 1], [], []>} : vector<4x4xf32>, vector<4x256xf32>, vector<4x256xf32> -> vector<4x256xf32>
    %206 = arith.addf %194, %205 : vector<4x256xf32>
    %207 = vector.extract_strided_slice %183 {offsets = [0, 18], sizes = [4, 256], strides = [1, 1]} : vector<4x290xf32> to vector<4x256xf32>
    %208 = vector.extract_strided_slice %180 {offsets = [0, 20], sizes = [4, 4], strides = [1, 1]} : vector<4x36xf32> to vector<4x4xf32>
    %cst_83 = arith.constant dense<0.000000e+00> : vector<4x256xf32>
    %209 = tpu.matmul %208, %207, %cst_83 {dimension_numbers = #tpu.dot_dimension_numbers<[1], [0], [0], [1], [0, 0, 1, 1], [], []>} : vector<4x4xf32>, vector<4x256xf32>, vector<4x256xf32> -> vector<4x256xf32>
    %210 = arith.addf %198, %209 : vector<4x256xf32>
    %211 = vector.extract_strided_slice %183 {offsets = [0, 32], sizes = [4, 256], strides = [1, 1]} : vector<4x290xf32> to vector<4x256xf32>
    %212 = vector.extract_strided_slice %180 {offsets = [0, 24], sizes = [4, 4], strides = [1, 1]} : vector<4x36xf32> to vector<4x4xf32>
    %cst_84 = arith.constant dense<0.000000e+00> : vector<4x256xf32>
    %213 = tpu.matmul %212, %211, %cst_84 {dimension_numbers = #tpu.dot_dimension_numbers<[1], [0], [0], [1], [0, 0, 1, 1], [], []>} : vector<4x4xf32>, vector<4x256xf32>, vector<4x256xf32> -> vector<4x256xf32>
    %214 = arith.addf %202, %213 : vector<4x256xf32>
    %215 = vector.extract_strided_slice %183 {offsets = [0, 33], sizes = [4, 256], strides = [1, 1]} : vector<4x290xf32> to vector<4x256xf32>
    %216 = vector.extract_strided_slice %180 {offsets = [0, 28], sizes = [4, 4], strides = [1, 1]} : vector<4x36xf32> to vector<4x4xf32>
    %cst_85 = arith.constant dense<0.000000e+00> : vector<4x256xf32>
    %217 = tpu.matmul %216, %215, %cst_85 {dimension_numbers = #tpu.dot_dimension_numbers<[1], [0], [0], [1], [0, 0, 1, 1], [], []>} : vector<4x4xf32>, vector<4x256xf32>, vector<4x256xf32> -> vector<4x256xf32>
    %218 = arith.addf %206, %217 : vector<4x256xf32>
    %219 = vector.extract_strided_slice %183 {offsets = [0, 34], sizes = [4, 256], strides = [1, 1]} : vector<4x290xf32> to vector<4x256xf32>
    %220 = vector.extract_strided_slice %180 {offsets = [0, 32], sizes = [4, 4], strides = [1, 1]} : vector<4x36xf32> to vector<4x4xf32>
    %cst_86 = arith.constant dense<0.000000e+00> : vector<4x256xf32>
    %221 = tpu.matmul %220, %219, %cst_86 {dimension_numbers = #tpu.dot_dimension_numbers<[1], [0], [0], [1], [0, 0, 1, 1], [], []>} : vector<4x4xf32>, vector<4x256xf32>, vector<4x256xf32> -> vector<4x256xf32>
    %222 = arith.addf %210, %221 : vector<4x256xf32>
    %223 = vector.broadcast %9 : vector<1x256xf32> to vector<4x256xf32>
    %224 = arith.mulf %214, %223 : vector<4x256xf32>
    %225 = arith.addf %218, %224 : vector<4x256xf32>
    %226 = vector.broadcast %10 : vector<1x256xf32> to vector<4x256xf32>
    %227 = arith.mulf %222, %226 : vector<4x256xf32>
    %228 = arith.addf %225, %227 : vector<4x256xf32>
    %229 = vector.broadcast %182 : vector<4x1xf32> to vector<4x256xf32>
    %230 = arith.addf %228, %229 : vector<4x256xf32>
    %231 = arith.addf %121, %230 : vector<4x256xf32>
    %232 = arith.addf %231, %8 : vector<4x256xf32>
    %233 = arith.addf %8, %232 : vector<4x256xf32>
    %c0_87 = arith.constant 0 : index
    %c0_88 = arith.constant 0 : index
    %c0_89 = arith.constant 0 : index
    %234 = vector.load %arg8[%c0_87, %c0_88, %c0_89] : memref<1x4x256xf32, #tpu.memory_space<vmem>>, vector<1x4x256xf32>
    %235 = vector.shape_cast %234 : vector<1x4x256xf32> to vector<4x256xf32>
    %236 = vector.shape_cast %233 : vector<4x256xf32> to vector<1x4x256xf32>
    tpu.vector_store %arg8[%c0_87, %c0_88, %c0_89], %236 {strides = array<i32>} : memref<1x4x256xf32, #tpu.memory_space<vmem>>, vector<1x4x256xf32>,
    return
  }
  func.func @transform_0(%arg0: i32) -> (i32, i32, i32) {
    %c0_i32 = arith.constant 0 : i32
    %c0_i32_0 = arith.constant 0 : i32
    %c0_i32_1 = arith.constant 0 : i32
    return %arg0, %c0_i32, %c0_i32_0 : i32, i32, i32
  }
  func.func @transform_1(%arg0: i32) -> (i32, i32) {
    %c0_i32 = arith.constant 0 : i32
    %c0_i32_0 = arith.constant 0 : i32
    %c0_i32_1 = arith.constant 0 : i32
    return %c0_i32, %c0_i32_0 : i32, i32
  }
  func.func @transform_2(%arg0: i32) -> (i32, i32) {
    %c0_i32 = arith.constant 0 : i32
    %c0_i32_0 = arith.constant 0 : i32
    %c0_i32_1 = arith.constant 0 : i32
    return %c0_i32, %c0_i32_0 : i32, i32
  }
  func.func @transform_3(%arg0: i32) -> (i32, i32) {
    %c0_i32 = arith.constant 0 : i32
    %c0_i32_0 = arith.constant 0 : i32
    %c0_i32_1 = arith.constant 0 : i32
    return %c0_i32, %c0_i32_0 : i32, i32
  }
  func.func @transform_4(%arg0: i32) -> (i32, i32) {
    %c0_i32 = arith.constant 0 : i32
    %c0_i32_0 = arith.constant 0 : i32
    %c0_i32_1 = arith.constant 0 : i32
    return %c0_i32, %c0_i32_0 : i32, i32
  }
  func.func @transform_5(%arg0: i32) -> (i32, i32, i32) {
    %c0_i32 = arith.constant 0 : i32
    %c0_i32_0 = arith.constant 0 : i32
    %c0_i32_1 = arith.constant 0 : i32
    %c0_i32_2 = arith.constant 0 : i32
    return %c0_i32, %c0_i32_0, %c0_i32_1 : i32, i32, i32
  }
  func.func @transform_6(%arg0: i32) -> (i32, i32, i32) {
    %c0_i32 = arith.constant 0 : i32
    %c0_i32_0 = arith.constant 0 : i32
    %c0_i32_1 = arith.constant 0 : i32
    %c0_i32_2 = arith.constant 0 : i32
    return %c0_i32, %c0_i32_0, %c0_i32_1 : i32, i32, i32
  }
  func.func @transform_7(%arg0: i32) -> (i32, i32, i32) {
    %c0_i32 = arith.constant 0 : i32
    %c0_i32_0 = arith.constant 0 : i32
    %c0_i32_1 = arith.constant 0 : i32
    return %arg0, %c0_i32, %c0_i32_0 : i32, i32, i32
  }
}

</mosaic_0001>

<bundles_post_ra>
// kernel: tpu_custom_call.1
= control target key start
LH: loop header
LB: loop body
LE: loop exit
PB: predicated region body
PF: predicated region fallthrough
CT: control target
= control target key end

     0   :  { %s5062_s0 = inlined_call_operand.vmem [shape: f32[2,8,120], index: 0, kind: input, shape index: {}]   ;;  %s5063_s1 = inlined_call_operand.hbm [shape: f32[4,8], index: 1, kind: input, shape index: {}]   ;;  %s5064_s2 = inlined_call_operand.vmem [shape: f32[4,1], index: 2, kind: input, shape index: {}]   ;;  %s5065_s3 = inlined_call_operand.hbm [shape: f32[120,256], index: 3, kind: input, shape index: {}]   ;;  %s5066_s4 = inlined_call_operand.vmem [shape: f32[2,256], index: 4, kind: input, shape index: {}]   ;;  %s5067_s5 = inlined_call_operand.vmem [shape: f32[4,4,36], index: 5, kind: input, shape index: {}]   ;;  %s5068_s6 = inlined_call_operand.vmem [shape: f32[4,4,1], index: 6, kind: input, shape index: {}]   ;;  %s5069_s7 = inlined_call_operand.hbm [shape: f32[2,4,256], index: 7, kind: output, shape index: {}]  }
   0x1   :  { %5097 = sst [smem:[#allocation11_spill]] %s5062_s0 }
   0x2   :  { %5098 = sst [smem:[#allocation12_spill]] %s5063_s1 }
   0x3   :  { %12 = vsyncpa [#allocation3], 0 }
   0x4   :  { %13 = vsyncpa [#allocation6], 0 }
   0x5   :  { %14 = vsyncpa [#allocation4], 0 }
   0x6   :  { %16 = vsyncpa [#allocation4 + $0x1], 0  ;;  %s4381_s24 = smov 0   ;;  %s4383_s25 = smov 0  }
   0x7   :  { %s4385_s26 = smov 0   ;;  %s4387_s27 = smov 0  }
   0x8 LB: > { %s4402_s28 = sadd.s32 4294967295, %s4316_s27   ;;  %s3892_s29 = sadd.s32 4294967294, %s4316_s27   ;;  %s4316_s27 = sphi %s4387_s27, %s5128_s27   ;;  %s4312_s26 = sphi %s4385_s26, %s5127_s26   ;;  %s4308_s25 = sphi %s4383_s25, %s5126_s25   ;;  %s4304_s24 = sphi %s4381_s24, %s5125_s24  }
   0x9   : > { %s4406_s30 = sadd.s32 1, %s4316_s27   ;;  %s181_s8 = sadd.s32 1, %s4312_s26 }
   0xa   : > { %s178_s9 = ssub.s32 %s4316_s27, %s4406_s30  ;;  %p191_p0 = scmp.ne.s32.totalorder %s4312_s26, %s4308_s25 }
   0xb   : > { %p179_p1 = scmp.eq.s32.totalorder %s178_s9, 0  ;;  %p192_p2 = scmp.eq.s32.totalorder %s4402_s28, 1 }
   0xc   : > { %p197_p3 = scmp.ne.s32.totalorder %s4308_s25, %s4304_s24  ;;  %p198_p4 = scmp.eq.s32.totalorder %s3892_s29, 1 }
   0xd   : > { %s4417_s10 = scalar_select %p179_p1, %s4312_s26, %s181_s8  }
   0xe   : > { %p4419_p5 = por %p192_p2, %p191_p0  ;;  %p4423_p6 = por %p198_p4, %p197_p3 }
   0xf   : > { %p3893_p7 = scmp.ge.s32.totalorder %s4316_s27, 1  ;;  %p205_p8 = scmp.lt.s32.totalorder %s4316_s27, 3 }
  0x10   : > { %s5099_s11 = scalar_select %p4419_p5, 1, 0 }
  0x11   : > { %s5100_s12 = scalar_select %p4423_p6, 1, 0 }
  0x12   : > { %p5070_p9 = scmp.eq.s32.totalorder %s4402_s28, 0  ;;  %p4430_p10 = pnand %p3893_p7, %p205_p8 }
  0x13   : > { %s4318_s14 = smov [#allocation2]   ;;  %s4319_s16 = smov [#allocation5]  }
  0x14   : > { %s5101_s13 = scalar_select %p4430_p10, 1, 0 }
  0x15   : > { %s218_s15 = sshll.u32 %s4318_s14, 4  ;;  %p4118_p11 = pneg %p4430_p10  ;;  %s219_s15 = int_to_ptr.vmem [resolvable:$true] %s218_s15 }
  0x16   : > { %s231_s17 = sshll.u32 %s4319_s16, 4  ;;  %s5103_s1 = sld [smem:[#allocation12_spill]]  ;;  %s4442_s17 = int_to_ptr.vmem [resolvable:$true] %s231_s17 }
  0x17   : > { %p4438_p12 = pnand %p5070_p9, %p4118_p11 }
  0x19   : > { %p4192_p0 = pneg %p4438_p12 }
  0x1c   : > { %s4190_s21 = scalar_lea.hbm %s5103_s1, 64 }
  0x1d   : > { %p4191_p13 = scmp.ne.s32.totalorder %s5103_s1, %s4190_s21  ;;  %p4197_p3 = scmp.lt.u32.totalorder %s4190_s21, %s5103_s1 }
  0x1f   : > { %p4193_p1 = pnand %p4192_p0, %p4191_p13 }
  0x21   : > { %p4194_p2 = pneg %p4193_p1 }
  0x23   : > { %p4199_p4 = pnand %p4197_p3, %p4194_p2 }
  0x25   : > { %4202 = shalt.err (!%p4199_p4)
}
  0x26   : > { %s4203_s9 = scalar_lea.vmem %s219_s15, 64  ;;  %p4211_p9 = scmp.lt.s32.totalorder %s219_s15, %s219_s15 }
  0x27   : > { %p4204_p7 = scmp.ne.s32.totalorder %s219_s15, %s4203_s9  ;;  %p4212_p6 = scmp.lt.s32.totalorder %s4203_s9, %s4203_s9 }
  0x29   : > { %p4206_p8 = pnand %p4204_p7, %p4192_p0  ;;  %p4213_p5 = por %p4212_p6, %p4211_p9 }
  0x2b   : > { %p4207_p11 = pneg %p4206_p8 }
  0x2d   : > { %p4214_p10 = pnand %p4213_p5, %p4207_p11 }
  0x2f   : > { %4217 = shalt.err (!%p4214_p10)
}
  0x30   : > { %4121 = dma.hbm_to_vmem [thread:$0]  (!%p4438_p12), %s5103_s1, 64, %s219_s15, [#allocation3]  }
  0x31   : > { %s4218_s21 = scalar_lea.hbm %s5065_s3, 3840 }
  0x32   : > { %p4219_p13 = scmp.ne.s32.totalorder %s5065_s3, %s4218_s21  ;;  %p4225_p9 = scmp.lt.u32.totalorder %s4218_s21, %s5065_s3 }
  0x34   : > { %p4221_p6 = pnand %p4219_p13, %p4192_p0 }
  0x36   : > { %p4222_p5 = pneg %p4221_p6 }
  0x38   : > { %p4227_p10 = pnand %p4225_p9, %p4222_p5 }
  0x3a   : > { %4230 = shalt.err (!%p4227_p10)
}
  0x3b   : > { %s4231_s15 = scalar_lea.vmem %s4442_s17, 3840  ;;  %p4239_p4 = scmp.lt.s32.totalorder %s4442_s17, %s4442_s17 }
  0x3c   : > { %p4232_p1 = scmp.ne.s32.totalorder %s4442_s17, %s4231_s15  ;;  %p4240_p7 = scmp.lt.s32.totalorder %s4231_s15, %s4231_s15 }
  0x3e   : > { %p4234_p2 = pnand %p4232_p1, %p4192_p0  ;;  %p4241_p8 = por %p4240_p7, %p4239_p4 }
  0x40   : > { %p4235_p3 = pneg %p4234_p2 }
  0x42   : > { %p4242_p11 = pnand %p4241_p8, %p4235_p3 }
  0x44   : > { %4245 = shalt.err (!%p4242_p11)
}
  0x45   : > { %s4320_s9 = smov 256   ;;  %s4321_s14 = smov 16  }
  0x46   : > { %4124 = dma.hbm_to_vmem [thread:$0]  (!%p4438_p12), %s5065_s3, 3840, %s4442_s17, [#allocation6], %s4320_s9, %s4320_s9, %s4321_s14  }
  0x47   : > { %p5104_p13 = scmp.ne.s32.totalorder %s5101_s13, 0 }
  0x48   : > { %p5105_p0 = scmp.eq.s32.totalorder (!%p5104_p13), %s4402_s28, 0 }
  0x49   : > { %263 = sbr.rel (%p5104_p13) target bundleno = 2564 (0xa04), region = 48 }
  0x50   : > { %4291 = dma.done.wait (%p5105_p0), [#allocation3], 64   ;;  %p5106_p6 = pmov %p5105_p0 }
  0x51   : > { %p5107_p5 = pmov %p5105_p0 }
  0x52   : > { %4293 = vsyncadd (%p5106_p6), [#allocation3], 4294967232 }
  0x53   : > { %4295 = dma.done.wait (%p5107_p5), [#allocation6], 3840   ;;  %p5108_p9 = pmov %p5105_p0 }
  0x54   : > { %p298_p10 = scmp.lt.s32.totalorder %s4402_s28, 1  ;;  %v4322_v0 = vmov 0.0   ;;  %vm4323_vm0 = vmmov 0   ;;  %v4324_v1 = vmov 0   ;;  %s5109_s0 = sld [smem:[#allocation11_spill]]  ;;  %vm310_vm1 = vcmask 64512  }
  0x55   : > { %4297 = vsyncadd (%p5108_p9), [#allocation6], 4294963456  ;;  %4027 = vmatprep.subr.mxu0 %v4322_v0  ;;  %4029 = vmatprep.mubr.msk.f32.mxu0 %vm4323_vm0, %v4322_v0  ;;  %v303_v3 = vld [vmem:[#allocation2] sm:$0xf]  ;;  %v385_v5 = vld [vmem:[#allocation5 + $0x8] sm:$0xff]  ;;  %vm414_vm2 = vcmask 982016  }
  0x56   : > { %s299_s13 = scalar_select %p298_p10, %s4402_s28, 1  ;;  %4188 = vset.pattern.permute.xlu0 %v4324_v1  ;;  %482 = vmatprep.mubr.f32.mxu1 %v4322_v0  ;;  %v304_v4 = vld [vmem:[%s5064_s2] sm:$0xf]  ;;  %v384_v7 = vld [vmem:[#allocation5] sm:$0xff]  ;;  %v386_v9 = vld [vmem:[#allocation5 + $0x10] sm:$0xff]  ;;  %vm500_vm3 = vcmask 138240  }
  0x57   : > { %4189 = vset.pattern.permute.xlu1 %v4324_v1  ;;  %307 = vperm.xlu0 %4188, %v304_v4   ;;  %v387_v6 = vld [vmem:[#allocation5 + $0x18] sm:$0xff]  ;;  %v389_v10 = vld [vmem:[#allocation5 + $0x28] sm:$0xff]  ;;  %v4034_v12 = vpack.c.bf16 %v386_v9, %v384_v7  ;;  %v388_v14 = vld [vmem:[#allocation5 + $0x20] sm:$0xff]  ;;  %s5091_s29 = smov 17   ;;  %s4326_s9 = smov 116   ;;  %vm517_vm4 = vcmask 916480  }
  0x58   : > { %s3901_s17 = sshll.u32 %s299_s13, 3  ;;  %v4032_v8 = vpack.c.bf16 %v387_v6, %v385_v5  ;;  %v391_v11 = vld [vmem:[#allocation5 + $0x38] sm:$0xff]  ;;  %v390_v15 = vld [vmem:[#allocation5 + $0x30] sm:$0xff]  ;;  %v393_v16 = vld [vmem:[#allocation5 + $0x48] sm:$0xff]  ;;  %s4327_s14 = smov 112   ;;  %vm523_vm5 = vcmask 1043456  }
  0x59   : > { %v4036_v13 = vpack.c.bf16 %v391_v11, %v389_v10  ;;  %v395_v17 = vld [vmem:[#allocation5 + $0x58] sm:$0xff]  ;;  %v4038_v18 = vpack.c.bf16 %v390_v15, %v388_v14  ;;  %v392_v20 = vld [vmem:[#allocation5 + $0x40] sm:$0xff]  ;;  %v394_v21 = vld [vmem:[#allocation5 + $0x50] sm:$0xff]  ;;  %s5094_s16 = smov 124   ;;  %s5073_s19 = smov 111   ;;  %vm520_vm6 = vcmask 31744  }
  0x5a   : > { %s301_s21 = scalar_lea.vmem %s5109_s0, %s3901_s17  ;;  %4033 = vmatprep.subr.bf16.mxu1 %v4032_v8  ;;  %v4040_v19 = vpack.c.bf16 %v395_v17, %v393_v16  ;;  %v397_v22 = vld [vmem:[#allocation5 + $0x68] sm:$0xff]  ;;  %v399_v23 = vld [vmem:[#allocation5 + $0x78] sm:$0xff]  ;;  %v4042_v24 = vpack.c.bf16 %v394_v21, %v392_v20  ;;  %v396_v26 = vld [vmem:[#allocation5 + $0x60] sm:$0xff]  ;;  %s5093_s13 = smov 108   ;;  %vm684_vm7 = vcmask 908288   ;;  %vm772_vm8 = vcmask 1039360  }
  0x5b   : > { %v302_v2 = vld [vmem:[%s301_s21] sm:$0xff]  ;;  %4035 = vmatpush1.bf16.msra.mxu1 %v4034_v12  ;;  %v4044_v25 = vpack.c.bf16 %v399_v23, %v397_v22  ;;  %v398_v27 = vld [vmem:[#allocation5 + $0x70] sm:$0xff]  ;;  %v401_v28 = vld [vmem:[#allocation5 + $0x88] sm:$0xff]  ;;  %s5077_s17 = smov 127   ;;  %s5087_s18 = smov 120   ;;  %vm860_vm9 = vcmask 900096  }
  0x5c   : > { %4028 = vmatpush3.msra.mxu0 %v302_v2  ;;  %4037 = vmatprep.subr.bf16.mxu1 %v4036_v13  ;;  %v403_v29 = vld [vmem:[#allocation5 + $0x98] sm:$0xff]  ;;  %v4046_v30 = vpack.c.bf16 %v398_v27, %v396_v26  ;;  %v400_v32 = vld [vmem:[#allocation5 + $0x80] sm:$0xff]  ;;  %v402_v33 = vld [vmem:[#allocation5 + $0x90] sm:$0xff]  ;;  %s5083_s20 = smov 110   ;;  %s5085_s21 = smov 104   ;;  %vm948_vm10 = vcmask 1031168  }
  0x5d   : > { %4030 = vmatmul.mubr.msk.f32.vlgmr.msra.gmra.mrb[0].mxu0 %vm310_vm1, %v303_v3  ;;  %v4048_v31 = vpack.c.bf16 %v403_v29, %v401_v28  ;;  %v405_v34 = vld [vmem:[#allocation5 + $0xa8] sm:$0xff]  ;;  %v407_v35 = vld [vmem:[#allocation5 + $0xb8] sm:$0xff]  ;;  %v4050_v36 = vpack.c.bf16 %v402_v33, %v400_v32  ;;  %v404_v38 = vld [vmem:[#allocation5 + $0xa0] sm:$0xff]  ;;  %s5095_s22 = smov 126   ;;  %s5081_s23 = smov 96   ;;  %vm1036_vm11 = vcmask 785408  }
  0x5e   : > { %592 = vmatprep.mubr.f32.mxu0 %v4322_v0  ;;  %v4052_v37 = vpack.c.bf16 %v407_v35, %v405_v34  ;;  %v406_v39 = vld [vmem:[#allocation5 + $0xb0] sm:$0xff]  ;;  %v409_v40 = vld [vmem:[#allocation5 + $0xc8] sm:$0xff]  ;;  %v411_v41 = vld [vmem:[#allocation5 + $0xd8] sm:$0xff]  ;;  %s5075_s8 = smov 100   ;;  %s5079_s15 = smov 95   ;;  %vm1126_vm12 = vcmask 777216  }
  0x5f   : > { %4039 = vmatpush1.bf16.msra.mxu1 %v4038_v18  ;;  %v4054_v42 = vpack.c.bf16 %v406_v39, %v404_v38  ;;  %v4056_v43 = vpack.c.bf16 %v411_v41, %v409_v40  ;;  %v408_v44 = vld [vmem:[#allocation5 + $0xc0] sm:$0xff]  ;;  %v410_v45 = vld [vmem:[#allocation5 + $0xd0] sm:$0xff]  ;;  %v413_v47 = vld [vmem:[#allocation5 + $0xe8] sm:$0xff]  ;;  %vm1216_vm13 = vcmask 769024   ;;  %s5120_s0 = smov 124   ;;  %s5121_s1 = smov 108  }
  0x60   : > { %4041 = vmatprep.subr.bf16.mxu1 %v4040_v19  ;;  %v4058_v46 = vpack.c.bf16 %v410_v45, %v408_v44  ;;  %v412_v48 = vld [vmem:[#allocation5 + $0xe0] sm:$0xff]  ;;  %v4525_v55 = vld [vmem:[%s5067_s5] sm:$0xf]  ;;  %p5123_p1 = scmp.ne.s32.totalorder %s5099_s11, 0 }
  0x61   : > { %v493_v61 = vld [vmem:[%s5068_s6] sm:$0xf] }
  0x63   : > { %4043 = vmatpush1.bf16.msra.mxu1 %v4042_v24 }
  0x64   : > { %4045 = vmatprep.subr.bf16.mxu1 %v4044_v25 }
  0x67   : > { %4047 = vmatpush1.bf16.msra.mxu1 %v4046_v30 }
  0x68   : > { %4049 = vmatprep.subr.bf16.mxu1 %v4048_v31 }
  0x6b   : > { %4051 = vmatpush1.bf16.msra.mxu1 %v4050_v36 }
  0x6c   : > { %4053 = vmatprep.subr.bf16.mxu1 %v4052_v37 }
  0x6f   : > { %4055 = vmatpush1.bf16.msra.mxu1 %v4054_v42 }
  0x70   : > { %4057 = vmatprep.subr.bf16.mxu1 %v4056_v43 }
  0x73   : > { %4059 = vmatpush1.bf16.msra.mxu1 %v4058_v46 }
  0x74   : > { %446 = vmatprep.subr.mxu1 %v413_v47  ;;  %v1299_v47 = vlaneseq }
  0x77   : > { %447 = vmatpush1.msra.mxu1 %v412_v48  ;;  %v1300_v48 = vshrl.u32 %v1299_v47, 7 }
  0xd6   : > { %v308_v49 = vpop.permute.xlu0 %307 }
 0x130   : > { %v380_v50 = vpop.f32.mrb[0].mxu0 }
 0x131   : > { %v381_v51 = vadd.f32 %v380_v50, %v308_v49  ;;  %v4031_v52 = vpop.f32.mrb[1].mxu0  ;;  %v1301_v49 = vsub.s32 0, %v1300_v48  ;;  %v489_v50 = vld [vmem:[%s5066_s4] ss:$2 sm:$0x3] }
 0x133   : > { %3903 = vmatmul.mubr.msk.f32.vlgmr.msra.gmra.mrb[0].mxu1 %vm414_vm2, %v381_v51  ;;  %v1305_v51 = vsub.s32 1, %v1300_v48  ;;  %v4640_v52 = vrot.slane %v489_v50, %v1301_v49 }
 0x134   : > { %1439 = vmatprep.mubr.f32.mxu1 %v4322_v0 }
 0x206   : > { %v4514_v53 = vpop.f32.mrb[0].mxu1 }
 0x207   : > { %496 = vrot.lane.b32.xlu0 %v4514_v53, %s5091_s29  ;;  %v4518_v54 = vpop.f32.mrb[1].mxu1 }
 0x208   : > { %498 = vrot.lane.b32.xlu1 %v4518_v54, %s5091_s29 }
 0x20b   : > { %507 = vrot.lane.b32.xlu0 %v4525_v55, %s4326_s9 }
 0x20f   : > { %676 = vrot.lane.b32.xlu0 %v4525_v55, %s4327_s14 }
 0x213   : > { %764 = vrot.lane.b32.xlu0 %v4525_v55, %s5094_s16 }
 0x279   : > { %v497_v56 = vpop.permute.xlu0 %496 }
 0x27a   : > { %v4534_v57 = vsel %vm500_vm3, 0.0, %v497_v56  ;;  %v499_v58 = vpop.permute.xlu1 %498 }
 0x27b   : > { %v505_v59 = vsel %vm500_vm3, %v499_v58, 0.0  ;;  %511 = vrot.lane.b32.xlu1 %v4534_v57, %s4327_s14  ;;  %v501_v60 = vsel %vm500_vm3, %v497_v56, %v499_v58  ;;  %v4642_v56 = vrot.slane %v489_v50, %v1305_v51 }
 0x27c   : > { %515 = vrot.lane.b32.xlu0 %v505_v59, %s4327_s14 }
 0x27d   : > { %v508_v62 = vpop.permute.xlu0 %507 }
 0x27f   : > { %678 = vrot.lane.b32.xlu1 %v4534_v57, %s5073_s19 }
 0x280   : > { %852 = vrot.lane.b32.xlu0 %v4525_v55, %s5093_s13 }
 0x281   : > { %v677_v63 = vpop.permute.xlu0 %676 }
 0x283   : > { %766 = vrot.lane.b32.xlu1 %v4534_v57, %s5077_s17 }
 0x284   : > { %940 = vrot.lane.b32.xlu0 %v4525_v55, %s5087_s18 }
 0x285   : > { %v765_v1 = vpop.permute.xlu0 %764 }
 0x287   : > { %513 = vrot.lane.b32.xlu1 %v501_v60, %s4327_s14 }
 0x288   : > { %682 = vrot.lane.b32.xlu0 %v505_v59, %s5073_s19 }
 0x28b   : > { %854 = vrot.lane.b32.xlu1 %v4534_v57, %s5083_s20 }
 0x28c   : > { %1028 = vrot.lane.b32.xlu0 %v4525_v55, %s5085_s21 }
 0x28f   : > { %942 = vrot.lane.b32.xlu1 %v4534_v57, %s5095_s22 }
 0x290   : > { %770 = vrot.lane.b32.xlu0 %v505_v59, %s5077_s17 }
 0x293   : > { %680 = vrot.lane.b32.xlu1 %v501_v60, %s5073_s19  ;;  %s5089_s19 = smov 94  }
 0x294   : > { %858 = vrot.lane.b32.xlu0 %v505_v59, %s5083_s20 }
 0x297   : > { %1030 = vrot.lane.b32.xlu1 %v4534_v57, %s5081_s23 }
 0x298   : > { %1118 = vrot.lane.b32.xlu0 %v4525_v55, %s5075_s8  ;;  %s5111_s8 = smov 127  }
 0x29b   : > { %768 = vrot.lane.b32.xlu1 %v501_v60, %s5077_s17  ;;  %s5110_s17 = smov 111  }
 0x29c   : > { %946 = vrot.lane.b32.xlu0 %v505_v59, %s5095_s22 }
 0x29f   : > { %856 = vrot.lane.b32.xlu1 %v501_v60, %s5083_s20 }
 0x2a0   : > { %1034 = vrot.lane.b32.xlu0 %v505_v59, %s5081_s23 }
 0x2a3   : > { %1120 = vrot.lane.b32.xlu1 %v4534_v57, %s5079_s15 }
 0x2a4   : > { %1124 = vrot.lane.b32.xlu0 %v505_v59, %s5079_s15 }
 0x2a7   : > { %944 = vrot.lane.b32.xlu1 %v501_v60, %s5095_s22 }
 0x2a8   : > { %1214 = vrot.lane.b32.xlu0 %v505_v59, %s5089_s19 }
 0x2ab   : > { %1032 = vrot.lane.b32.xlu1 %v501_v60, %s5081_s23 }
 0x2ac   : > { %1208 = vrot.lane.b32.xlu0 %v4525_v55, %s5081_s23  ;;  %s5112_s23 = smov 96  }
 0x2af   : > { %1122 = vrot.lane.b32.xlu1 %v501_v60, %s5079_s15  ;;  %s5113_s15 = smov 95  }
 0x2b3   : > { %1212 = vrot.lane.b32.xlu1 %v501_v60, %s5089_s19 }
 0x2b7   : > { %1210 = vrot.lane.b32.xlu1 %v4534_v57, %s5089_s19 }
 0x2bb   : > { %1330 = vperm.xlu1 %4189, %v493_v61  }
 0x2ed   : > { %v512_v2 = vpop.permute.xlu1 %511 }
 0x2ee   : > { %v516_v3 = vpop.permute.xlu0 %515 }
 0x2f1   : > { %v679_v4 = vpop.permute.xlu1 %678 }
 0x2f2   : > { %v853_v5 = vpop.permute.xlu0 %852 }
 0x2f5   : > { %v767_v6 = vpop.permute.xlu1 %766 }
 0x2f6   : > { %v941_v7 = vpop.permute.xlu0 %940 }
 0x2f9   : > { %v514_v8 = vpop.permute.xlu1 %513 }
 0x2fa   : > { %v518_v9 = vsel %vm517_vm4, %v512_v2, %v514_v8  ;;  %v683_v10 = vpop.permute.xlu0 %682  ;;  %v519_v11 = vsel %vm517_vm4, %v514_v8, %v516_v3 }
 0x2fb   : > { %3905 = vmatprep.subr.msk.mxu0 %vm523_vm5, %v519_v11 }
 0x2fc   : > { %3906 = vmatpush1.msk.msra.mxu0 %vm523_vm5, %v518_v9 }
 0x2fd   : > { %3907 = vmatmul.mubr.msk.f32.vlgmr.msra.gmra.mrb[2].mxu0 %vm520_vm6, %v508_v62  ;;  %3908 = vmatprep.subr.msk.mxu0 %vm523_vm5, %v501_v60  ;;  %v855_v12 = vpop.permute.xlu1 %854 }
 0x2fe   : > { %v1029_v13 = vpop.permute.xlu0 %1028  ;;  %3909 = vmatpush1.msk.msra.mxu0 %vm523_vm5, %v4534_v57  ;;  %669 = vmatprep.mubr.f32.mxu0 %v4322_v0 }
 0x301   : > { %v943_v14 = vpop.permute.xlu1 %942 }
 0x302   : > { %v771_v15 = vpop.permute.xlu0 %770 }
 0x305   : > { %3910 = vmatmul.mubr.msk.f32.vlgmr.msra.gmra.mrb[2].mxu0 %vm520_vm6, %v4525_v55  ;;  %v681_v16 = vpop.permute.xlu1 %680 }
 0x306   : > { %v685_v17 = vsel %vm684_vm7, %v679_v4, %v681_v16  ;;  %v686_v18 = vsel %vm684_vm7, %v681_v16, %v683_v10  ;;  %757 = vmatprep.mubr.f32.mxu0 %v4322_v0  ;;  %v859_v19 = vpop.permute.xlu0 %858 }
 0x307   : > { %3911 = vmatprep.subr.msk.mxu0 %vm523_vm5, %v686_v18 }
 0x308   : > { %3912 = vmatpush1.msk.msra.mxu0 %vm523_vm5, %v685_v17  ;;  %v4660_v17 = vld [vmem:[%s5067_s5 + $0x4] sm:$0xf] }
 0x309   : > { %3913 = vmatmul.mubr.msk.f32.vlgmr.msra.gmra.mrb[4].mxu0 %vm520_vm6, %v677_v63  ;;  %v1031_v20 = vpop.permute.xlu1 %1030  ;;  %v3904_v63 = vld [vmem:[%s5066_s4 + $0x1] ss:$2 sm:$0x3] }
 0x30a   : > { %845 = vmatprep.mubr.f32.mxu0 %v4322_v0  ;;  %v1119_v21 = vpop.permute.xlu0 %1118  ;;  %v4649_v2 = vrot.slane %v3904_v63, %v1301_v49  ;;  %v4651_v3 = vrot.slane %v3904_v63, %v1305_v51 }
 0x30d   : > { %v769_v22 = vpop.permute.xlu1 %768 }
 0x30e   : > { %v773_v23 = vsel %vm772_vm8, %v767_v6, %v769_v22  ;;  %v774_v24 = vsel %vm772_vm8, %v769_v22, %v771_v15  ;;  %v947_v28 = vpop.permute.xlu0 %946 }
 0x30f   : > { %3914 = vmatprep.subr.msk.mxu0 %vm523_vm5, %v774_v24 }
 0x310   : > { %3915 = vmatpush1.msk.msra.mxu0 %vm523_vm5, %v773_v23  ;;  %v3933_v23 = vld [vmem:[%s5068_s6 + $0x4] sm:$0xf] }
 0x311   : > { %3916 = vmatmul.mubr.msk.f32.vlgmr.msra.gmra.mrb[4].mxu0 %vm520_vm6, %v765_v1  ;;  %v857_v25 = vpop.permute.xlu1 %856 }
 0x312   : > { %v861_v26 = vsel %vm860_vm9, %v855_v12, %v857_v25  ;;  %v862_v27 = vsel %vm860_vm9, %v857_v25, %v859_v19  ;;  %933 = vmatprep.mubr.f32.mxu0 %v4322_v0  ;;  %v1035_v30 = vpop.permute.xlu0 %1034 }
 0x313   : > { %3917 = vmatprep.subr.msk.mxu0 %vm523_vm5, %v862_v27 }
 0x314   : > { %3918 = vmatpush1.msk.msra.mxu0 %vm523_vm5, %v861_v26 }
 0x315   : > { %3919 = vmatmul.mubr.msk.f32.vlgmr.msra.gmra.mrb[6].mxu0 %vm520_vm6, %v853_v5  ;;  %v1121_v29 = vpop.permute.xlu1 %1120 }
 0x316   : > { %1021 = vmatprep.mubr.f32.mxu0 %v4322_v0  ;;  %v1125_v37 = vpop.permute.xlu0 %1124 }
 0x319   : > { %v945_v31 = vpop.permute.xlu1 %944 }
 0x31a   : > { %v949_v32 = vsel %vm948_vm10, %v943_v14, %v945_v31  ;;  %v950_v33 = vsel %vm948_vm10, %v945_v31, %v947_v28  ;;  %v1215_v41 = vpop.permute.xlu0 %1214 }
 0x31b   : > { %3920 = vmatprep.subr.msk.mxu0 %vm523_vm5, %v950_v33 }
 0x31c   : > { %3921 = vmatpush1.msk.msra.mxu0 %vm523_vm5, %v949_v32 }
 0x31d   : > { %3922 = vmatmul.mubr.msk.f32.vlgmr.msra.gmra.mrb[6].mxu0 %vm520_vm6, %v941_v7  ;;  %v1033_v34 = vpop.permute.xlu1 %1032 }
 0x31e   : > { %v1037_v35 = vsel %vm1036_vm11, %v1031_v20, %v1033_v34  ;;  %v1038_v36 = vsel %vm1036_vm11, %v1033_v34, %v1035_v30  ;;  %1109 = vmatprep.mubr.f32.mxu0 %v4322_v0  ;;  %v1209_v45 = vpop.permute.xlu0 %1208 }
 0x31f   : > { %3923 = vmatprep.subr.msk.mxu0 %vm523_vm5, %v1038_v36 }
 0x320   : > { %3924 = vmatpush1.msk.msra.mxu0 %vm523_vm5, %v1037_v35 }
 0x321   : > { %3925 = vmatmul.mubr.msk.f32.vlgmr.msra.gmra.mrb[2].mxu0 %vm520_vm6, %v1029_v13  ;;  %v1123_v38 = vpop.permute.xlu1 %1122 }
 0x322   : > { %v1127_v39 = vsel %vm1126_vm12, %v1121_v29, %v1123_v38  ;;  %v1128_v40 = vsel %vm1126_vm12, %v1123_v38, %v1125_v37  ;;  %1199 = vmatprep.mubr.f32.mxu0 %v4322_v0 }
 0x323   : > { %3926 = vmatprep.subr.msk.mxu0 %vm523_vm5, %v1128_v40 }
 0x324   : > { %3927 = vmatpush1.msk.msra.mxu0 %vm523_vm5, %v1127_v39 }
 0x325   : > { %3928 = vmatmul.mubr.msk.f32.vlgmr.msra.gmra.mrb[4].mxu0 %vm520_vm6, %v1119_v21  ;;  %v1213_v42 = vpop.permute.xlu1 %1212 }
 0x326   : > { %v1218_v43 = vsel %vm1216_vm13, %v1213_v42, %v1215_v41  ;;  %1289 = vmatprep.mubr.f32.mxu0 %v4322_v0 }
 0x327   : > { %3929 = vmatprep.subr.msk.mxu0 %vm523_vm5, %v1218_v43 }
 0x329   : > { %v1211_v44 = vpop.permute.xlu1 %1210 }
 0x32a   : > { %v1217_v46 = vsel %vm1216_vm13, %v1211_v44, %v1213_v42 }
 0x32b   : > { %3930 = vmatpush1.msk.msra.mxu0 %vm523_vm5, %v1217_v46 }
 0x32c   : > { %3931 = vmatmul.mubr.msk.f32.vlgmr.msra.gmra.mrb[6].mxu0 %vm520_vm6, %v1209_v45 }
 0x32d   : > { %1603 = vmatprep.mubr.f32.mxu0 %v4322_v0 }
 0x33a   : > { %v1331_v8 = vpop.permute.xlu1 %1330 }
 0x3f4   : > { %v1111_v55 = vpop.f32.mrb[2].mxu0 }
 0x3f5   : > { %v1113_v57 = vpop.f32.mrb[3].mxu0  ;;  %v1309_v58 = vmul.f32 %v4640_v52, %v1111_v55 }
 0x3f6   : > { %v1310_v59 = vmul.f32 %v4642_v56, %v1113_v57 }
 0x3f8   : > { %v1201_v60 = vpop.f32.mrb[4].mxu0 }
 0x3f9   : > { %v1311_v61 = vadd.f32 %v1309_v58, %v1201_v60  ;;  %v1203_v62 = vpop.f32.mrb[5].mxu0 }
 0x3fa   : > { %v1312_v1 = vadd.f32 %v1310_v59, %v1203_v62 }
 0x3ff   : > { %v1291_v4 = vpop.f32.mrb[6].mxu0 }
 0x400   : > { %v1324_v5 = vmul.f32 %v4649_v2, %v1291_v4  ;;  %v1293_v6 = vpop.f32.mrb[7].mxu0 }
 0x401   : > { %v1325_v7 = vmul.f32 %v4651_v3, %v1293_v6 }
 0x402   : > { %v1326_v9 = vadd.f32 %v1324_v5, %v1311_v61 }
 0x403   : > { %v1327_v10 = vadd.f32 %v1325_v7, %v1312_v1 }
 0x404   : > { %v1333_v11 = vadd.f32 %v1331_v8, %v1326_v9 }
 0x405   : > { %v1334_v12 = vadd.f32 %v1331_v8, %v1327_v10 }
 0x406   : > { %vm1335_vm14 = vcmp.gt.f32.partialorder %v1333_v11, 0.0  ;;  %v1337_v13 = vmul.f32 0.01, %v1333_v11 }
 0x407   : > { %vm1336_vm15 = vcmp.gt.f32.partialorder %v1334_v12, 0.0  ;;  %v1338_v14 = vmul.f32 0.01, %v1334_v12 }
 0x408   : > { %v1339_v15 = vsel %vm1335_vm14, %v1333_v11, %v1337_v13 }
 0x409   : > { %1347 = vrot.lane.b32.xlu0 %v1339_v15, %s5091_s29  ;;  %v1340_v16 = vsel %vm1336_vm15, %v1334_v12, %v1338_v14 }
 0x40a   : > { %1349 = vrot.lane.b32.xlu1 %v1340_v16, %s5091_s29 }
 0x40d   : > { %1523 = vrot.lane.b32.xlu0 %v4660_v17, %s4327_s14 }
 0x40e   : > { %1357 = vrot.lane.b32.xlu1 %v4660_v17, %s4326_s9 }
 0x411   : > { %1610 = vrot.lane.b32.xlu0 %v4660_v17, %s5094_s16 }
 0x412   : > { %1697 = vrot.lane.b32.xlu1 %v4660_v17, %s5093_s13 }
 0x416   : > { %1784 = vrot.lane.b32.xlu1 %v4660_v17, %s5087_s18  ;;  %s5117_s18 = smov 110  }
 0x41a   : > { %1871 = vrot.lane.b32.xlu1 %v4660_v17, %s5085_s21  ;;  %s5118_s21 = smov 94  }
 0x47b   : > { %v1348_v18 = vpop.permute.xlu0 %1347 }
 0x47c   : > { %v1354_v19 = vsel %vm500_vm3, 0.0, %v1348_v18  ;;  %v1350_v20 = vpop.permute.xlu1 %1349 }
 0x47d   : > { %1361 = vrot.lane.b32.xlu0 %v1354_v19, %s4327_s14  ;;  %1699 = vrot.lane.b32.xlu1 %v1354_v19, %s5083_s20  ;;  %v1355_v21 = vsel %vm500_vm3, %v1350_v20, 0.0  ;;  %v1351_v22 = vsel %vm500_vm3, %v1348_v18, %v1350_v20 }
 0x47f   : > { %v1524_v26 = vpop.permute.xlu0 %1523 }
 0x480   : > { %v1358_v24 = vpop.permute.xlu1 %1357 }
 0x481   : > { %1525 = vrot.lane.b32.xlu0 %v1354_v19, %s5110_s17  ;;  %1786 = vrot.lane.b32.xlu1 %v1354_v19, %s5095_s22 }
 0x483   : > { %v1611_v28 = vpop.permute.xlu0 %1610 }
 0x484   : > { %v1698_v25 = vpop.permute.xlu1 %1697 }
 0x485   : > { %1612 = vrot.lane.b32.xlu0 %v1354_v19, %s5111_s8  ;;  %2051 = vrot.lane.b32.xlu1 %v1354_v19, %s5089_s19 }
 0x488   : > { %v1785_v27 = vpop.permute.xlu1 %1784 }
 0x489   : > { %1873 = vrot.lane.b32.xlu0 %v1354_v19, %s5112_s23  ;;  %1365 = vrot.lane.b32.xlu1 %v1355_v21, %s4327_s14 }
 0x48c   : > { %v4708_v29 = vpop.permute.xlu1 %1871 }
 0x48d   : > { %1962 = vrot.lane.b32.xlu0 %v1354_v19, %s5113_s15  ;;  %1529 = vrot.lane.b32.xlu1 %v1355_v21, %s5110_s17 }
 0x491   : > { %1703 = vrot.lane.b32.xlu1 %v1355_v21, %s5083_s20  ;;  %1363 = vrot.lane.b32.xlu0 %v1351_v22, %s4327_s14 }
 0x495   : > { %1616 = vrot.lane.b32.xlu1 %v1355_v21, %s5111_s8  ;;  %1527 = vrot.lane.b32.xlu0 %v1351_v22, %s5110_s17 }
 0x499   : > { %1790 = vrot.lane.b32.xlu1 %v1355_v21, %s5095_s22  ;;  %1701 = vrot.lane.b32.xlu0 %v1351_v22, %s5083_s20  ;;  %s5114_s20 = smov 100  }
 0x49d   : > { %1877 = vrot.lane.b32.xlu1 %v1355_v21, %s5112_s23  ;;  %1614 = vrot.lane.b32.xlu0 %v1351_v22, %s5111_s8 }
 0x4a1   : > { %1966 = vrot.lane.b32.xlu1 %v1355_v21, %s5113_s15  ;;  %1788 = vrot.lane.b32.xlu0 %v1351_v22, %s5095_s22 }
 0x4a5   : > { %2055 = vrot.lane.b32.xlu1 %v1355_v21, %s5089_s19  ;;  %1875 = vrot.lane.b32.xlu0 %v1351_v22, %s5112_s23 }
 0x4a9   : > { %1964 = vrot.lane.b32.xlu0 %v1351_v22, %s5113_s15  ;;  %2049 = vrot.lane.b32.xlu1 %v4660_v17, %s5112_s23 }
 0x4ad   : > { %2053 = vrot.lane.b32.xlu0 %v1351_v22, %s5089_s19  ;;  %s5115_s19 = smov 120  }
 0x4b1   : > { %1960 = vrot.lane.b32.xlu0 %v4660_v17, %s5114_s20 }
 0x4b5   : > { %2148 = vperm.xlu0 %4188, %v3933_v23  }
 0x4ef   : > { %v1362_v30 = vpop.permute.xlu0 %1361  ;;  %v1700_v31 = vpop.permute.xlu1 %1699 }
 0x4f3   : > { %v1526_v32 = vpop.permute.xlu0 %1525  ;;  %v1787_v33 = vpop.permute.xlu1 %1786 }
 0x4f7   : > { %v1613_v34 = vpop.permute.xlu0 %1612  ;;  %v4710_v35 = vpop.permute.xlu1 %2051 }
 0x4fb   : > { %v1874_v36 = vpop.permute.xlu0 %1873  ;;  %v1366_v37 = vpop.permute.xlu1 %1365 }
 0x4ff   : > { %v1963_v38 = vpop.permute.xlu0 %1962  ;;  %v1530_v39 = vpop.permute.xlu1 %1529 }
 0x503   : > { %v1364_v40 = vpop.permute.xlu0 %1363  ;;  %v1704_v41 = vpop.permute.xlu1 %1703 }
 0x504   : > { %v1367_v42 = vsel %vm517_vm4, %v1362_v30, %v1364_v40  ;;  %v1368_v43 = vsel %vm517_vm4, %v1364_v40, %v1366_v37  ;;  %v3962_v40 = vld [vmem:[%s5068_s6 + $0x8] sm:$0xf] }
 0x505   : > { %3934 = vmatprep.subr.msk.mxu1 %vm523_vm5, %v1368_v43 }
 0x506   : > { %3935 = vmatpush1.msk.msra.mxu1 %vm523_vm5, %v1367_v42 }
 0x507   : > { %v1528_v44 = vpop.permute.xlu0 %1527  ;;  %3936 = vmatmul.mubr.msk.f32.vlgmr.msra.gmra.mrb[2].mxu1 %vm520_vm6, %v1358_v24  ;;  %3937 = vmatprep.subr.msk.mxu1 %vm523_vm5, %v1351_v22  ;;  %v1617_v45 = vpop.permute.xlu1 %1616 }
 0x508   : > { %v1531_v46 = vsel %vm684_vm7, %v1526_v32, %v1528_v44  ;;  %v1532_v47 = vsel %vm684_vm7, %v1528_v44, %v1530_v39  ;;  %3938 = vmatpush1.msk.msra.mxu1 %vm523_vm5, %v1354_v19  ;;  %1516 = vmatprep.mubr.f32.mxu1 %v4322_v0 }
 0x509   : > { %3940 = vmatprep.subr.msk.mxu0 %vm523_vm5, %v1532_v47 }
 0x50a   : > { %3941 = vmatpush1.msk.msra.mxu0 %vm523_vm5, %v1531_v46 }
 0x50b   : > { %v1702_v48 = vpop.permute.xlu0 %1701  ;;  %3942 = vmatmul.mubr.msk.f32.vlgmr.msra.gmra.mrb[8].mxu0 %vm520_vm6, %v1524_v26  ;;  %v1791_v49 = vpop.permute.xlu1 %1790 }
 0x50c   : > { %v1706_v50 = vsel %vm860_vm9, %v1702_v48, %v1704_v41  ;;  %1690 = vmatprep.mubr.f32.mxu0 %v4322_v0  ;;  %v1705_v51 = vsel %vm860_vm9, %v1700_v31, %v1702_v48 }
 0x50d   : > { %3946 = vmatprep.subr.msk.mxu1 %vm523_vm5, %v1706_v50 }
 0x50f   : > { %v1615_v55 = vpop.permute.xlu0 %1614  ;;  %3939 = vmatmul.mubr.msk.f32.vlgmr.msra.gmra.mrb[2].mxu1 %vm520_vm6, %v4660_v17  ;;  %v1878_v59 = vpop.permute.xlu1 %1877 }
 0x510   : > { %v1618_v57 = vsel %vm772_vm8, %v1613_v34, %v1615_v55  ;;  %v1619_v58 = vsel %vm772_vm8, %v1615_v55, %v1617_v45  ;;  %3947 = vmatpush1.msk.msra.mxu1 %vm523_vm5, %v1705_v51  ;;  %1777 = vmatprep.mubr.f32.mxu1 %v4322_v0  ;;  %v4784_v34 = vld [vmem:[%s5067_s5 + $0x8] sm:$0xf] }
 0x511   : > { %3943 = vmatprep.subr.msk.mxu0 %vm523_vm5, %v1619_v58 }
 0x512   : > { %3944 = vmatpush1.msk.msra.mxu0 %vm523_vm5, %v1618_v57 }
 0x513   : > { %v1789_v60 = vpop.permute.xlu0 %1788  ;;  %3945 = vmatmul.mubr.msk.f32.vlgmr.msra.gmra.mrb[8].mxu0 %vm520_vm6, %v1611_v28  ;;  %3948 = vmatmul.mubr.msk.f32.vlgmr.msra.gmra.mrb[4].mxu1 %vm520_vm6, %v1698_v25  ;;  %v1967_v63 = vpop.permute.xlu1 %1966 }
 0x514   : > { %v1792_v61 = vsel %vm948_vm10, %v1787_v33, %v1789_v60  ;;  %v1793_v62 = vsel %vm948_vm10, %v1789_v60, %v1791_v49  ;;  %1864 = vmatprep.mubr.f32.mxu1 %v4322_v0  ;;  %2040 = vmatprep.mubr.f32.mxu0 %v4322_v0 }
 0x515   : > { %3949 = vmatprep.subr.msk.mxu1 %vm523_vm5, %v1793_v62 }
 0x516   : > { %3950 = vmatpush1.msk.msra.mxu1 %vm523_vm5, %v1792_v61 }
 0x517   : > { %v1876_v1 = vpop.permute.xlu0 %1875  ;;  %v2056_v7 = vpop.permute.xlu1 %2055 }
 0x518   : > { %v1880_v4 = vsel %vm1036_vm11, %v1876_v1, %v1878_v59  ;;  %v1879_v5 = vsel %vm1036_vm11, %v1874_v36, %v1876_v1 }
 0x519   : > { %3952 = vmatprep.subr.msk.mxu1 %vm523_vm5, %v1880_v4 }
 0x51b   : > { %v1965_v6 = vpop.permute.xlu0 %1964  ;;  %3951 = vmatmul.mubr.msk.f32.vlgmr.msra.gmra.mrb[4].mxu1 %vm520_vm6, %v1785_v27  ;;  %v2050_v13 = vpop.permute.xlu1 %2049 }
 0x51c   : > { %v1968_v8 = vsel %vm1126_vm12, %v1963_v38, %v1965_v6  ;;  %v1969_v9 = vsel %vm1126_vm12, %v1965_v6, %v1967_v63  ;;  %3953 = vmatpush1.msk.msra.mxu1 %vm523_vm5, %v1879_v5  ;;  %1951 = vmatprep.mubr.f32.mxu1 %v4322_v0 }
 0x51d   : > { %3955 = vmatprep.subr.msk.mxu0 %vm523_vm5, %v1969_v9 }
 0x51e   : > { %3956 = vmatpush1.msk.msra.mxu0 %vm523_vm5, %v1968_v8 }
 0x51f   : > { %v2054_v10 = vpop.permute.xlu0 %2053  ;;  %3954 = vmatmul.mubr.msk.f32.vlgmr.msra.gmra.mrb[2].mxu1 %vm520_vm6, %v4708_v29 }
 0x520   : > { %v2057_v11 = vsel %vm1216_vm13, %v4710_v35, %v2054_v10  ;;  %v2058_v12 = vsel %vm1216_vm13, %v2054_v10, %v2056_v7  ;;  %2129 = vmatprep.mubr.f32.mxu1 %v4322_v0 }
 0x521   : > { %3958 = vmatprep.subr.msk.mxu1 %vm523_vm5, %v2058_v12 }
 0x522   : > { %3959 = vmatpush1.msk.msra.mxu1 %vm523_vm5, %v2057_v11 }
 0x523   : > { %v1961_v14 = vpop.permute.xlu0 %1960  ;;  %3960 = vmatmul.mubr.msk.f32.vlgmr.msra.gmra.mrb[4].mxu1 %vm520_vm6, %v2050_v13 }
 0x524   : > { %3957 = vmatmul.mubr.msk.f32.vlgmr.msra.gmra.mrb[8].mxu0 %vm520_vm6, %v1961_v14  ;;  %2417 = vmatprep.mubr.f32.mxu1 %v4322_v0 }
 0x525   : > { %2253 = vmatprep.mubr.f32.mxu0 %v4322_v0 }
 0x534   : > { %v2149_v28 = vpop.permute.xlu0 %2148 }
 0x5f2   : > { %v1953_v15 = vpop.f32.mrb[2].mxu1 }
 0x5f3   : > { %v1955_v16 = vpop.f32.mrb[3].mxu1  ;;  %v2138_v17 = vmul.f32 %v1953_v15, %v4640_v52 }
 0x5f4   : > { %v2139_v19 = vmul.f32 %v1955_v16, %v4642_v56 }
 0x5f6   : > { %v2131_v18 = vpop.f32.mrb[4].mxu1 }
 0x5f7   : > { %v2142_v20 = vmul.f32 %v2131_v18, %v4649_v2  ;;  %v2042_v21 = vpop.f32.mrb[8].mxu0  ;;  %v2133_v22 = vpop.f32.mrb[5].mxu1 }
 0x5f8   : > { %v2140_v23 = vadd.f32 %v2138_v17, %v2042_v21  ;;  %v2143_v24 = vmul.f32 %v2133_v22, %v4651_v3  ;;  %v2044_v25 = vpop.f32.mrb[9].mxu0 }
 0x5f9   : > { %v2141_v26 = vadd.f32 %v2139_v19, %v2044_v25 }
 0x5fa   : > { %v2144_v27 = vadd.f32 %v2142_v20, %v2140_v23 }
 0x5fb   : > { %v2145_v29 = vadd.f32 %v2143_v24, %v2141_v26 }
 0x5fc   : > { %v2151_v30 = vadd.f32 %v2149_v28, %v2144_v27 }
 0x5fd   : > { %v2152_v31 = vadd.f32 %v2149_v28, %v2145_v29 }
 0x5fe   : > { %v4772_v32 = vadd.f32 %v2151_v30, %v4514_v53 }
 0x5ff   : > { %v4775_v33 = vadd.f32 %v2152_v31, %v4518_v54 }
 0x600   : > { %2161 = vrot.lane.b32.xlu1 %v4772_v32, %s5091_s29 }
 0x601   : > { %2163 = vrot.lane.b32.xlu0 %v4775_v33, %s5091_s29  ;;  %s5116_s29 = smov 104  }
 0x604   : > { %2337 = vrot.lane.b32.xlu1 %v4784_v34, %s4327_s14 }
 0x605   : > { %2171 = vrot.lane.b32.xlu0 %v4784_v34, %s4326_s9 }
 0x608   : > { %2424 = vrot.lane.b32.xlu1 %v4784_v34, %s5094_s16  ;;  %s5119_s16 = smov 17  }
 0x609   : > { %2511 = vrot.lane.b32.xlu0 %v4784_v34, %s5093_s13 }
 0x60d   : > { %2598 = vrot.lane.b32.xlu0 %v4784_v34, %s5115_s19 }
 0x611   : > { %2685 = vrot.lane.b32.xlu0 %v4784_v34, %s5116_s29 }
 0x672   : > { %v2162_v35 = vpop.permute.xlu1 %2161 }
 0x673   : > { %v2168_v36 = vsel %vm500_vm3, 0.0, %v2162_v35  ;;  %v2164_v37 = vpop.permute.xlu0 %2163 }
 0x674   : > { %2175 = vrot.lane.b32.xlu1 %v2168_v36, %s4327_s14  ;;  %2513 = vrot.lane.b32.xlu0 %v2168_v36, %s5117_s18  ;;  %v2169_v38 = vsel %vm500_vm3, %v2164_v37, 0.0  ;;  %v2165_v39 = vsel %vm500_vm3, %v2162_v35, %v2164_v37 }
 0x676   : > { %v2338_v43 = vpop.permute.xlu1 %2337 }
 0x677   : > { %v2172_v41 = vpop.permute.xlu0 %2171 }
 0x678   : > { %2339 = vrot.lane.b32.xlu1 %v2168_v36, %s5110_s17  ;;  %2600 = vrot.lane.b32.xlu0 %v2168_v36, %s5095_s22 }
 0x67a   : > { %v2425_v45 = vpop.permute.xlu1 %2424 }
 0x67b   : > { %v2512_v42 = vpop.permute.xlu0 %2511 }
 0x67c   : > { %2426 = vrot.lane.b32.xlu1 %v2168_v36, %s5111_s8  ;;  %2865 = vrot.lane.b32.xlu0 %v2168_v36, %s5118_s21 }
 0x67f   : > { %v2599_v44 = vpop.permute.xlu0 %2598 }
 0x680   : > { %2687 = vrot.lane.b32.xlu1 %v2168_v36, %s5112_s23  ;;  %2179 = vrot.lane.b32.xlu0 %v2169_v38, %s4327_s14 }
 0x683   : > { %v4832_v46 = vpop.permute.xlu0 %2685 }
 0x684   : > { %2776 = vrot.lane.b32.xlu1 %v2168_v36, %s5113_s15  ;;  %2343 = vrot.lane.b32.xlu0 %v2169_v38, %s5110_s17 }
 0x688   : > { %2517 = vrot.lane.b32.xlu0 %v2169_v38, %s5117_s18  ;;  %2177 = vrot.lane.b32.xlu1 %v2165_v39, %s4327_s14 }
 0x68c   : > { %2430 = vrot.lane.b32.xlu0 %v2169_v38, %s5111_s8  ;;  %2341 = vrot.lane.b32.xlu1 %v2165_v39, %s5110_s17 }
 0x690   : > { %2604 = vrot.lane.b32.xlu0 %v2169_v38, %s5095_s22  ;;  %2515 = vrot.lane.b32.xlu1 %v2165_v39, %s5117_s18 }
 0x694   : > { %2691 = vrot.lane.b32.xlu0 %v2169_v38, %s5112_s23  ;;  %2428 = vrot.lane.b32.xlu1 %v2165_v39, %s5111_s8 }
 0x698   : > { %2780 = vrot.lane.b32.xlu0 %v2169_v38, %s5113_s15  ;;  %2602 = vrot.lane.b32.xlu1 %v2165_v39, %s5095_s22 }
 0x69c   : > { %2869 = vrot.lane.b32.xlu0 %v2169_v38, %s5118_s21  ;;  %2689 = vrot.lane.b32.xlu1 %v2165_v39, %s5112_s23 }
 0x6a0   : > { %2778 = vrot.lane.b32.xlu1 %v2165_v39, %s5113_s15  ;;  %2863 = vrot.lane.b32.xlu0 %v4784_v34, %s5112_s23 }
 0x6a4   : > { %2867 = vrot.lane.b32.xlu1 %v2165_v39, %s5118_s21 }
 0x6a8   : > { %2774 = vrot.lane.b32.xlu1 %v4784_v34, %s5114_s20 }
 0x6ac   : > { %2962 = vperm.xlu1 %4189, %v3962_v40  }
 0x6e6   : > { %v2176_v47 = vpop.permute.xlu1 %2175  ;;  %v2514_v48 = vpop.permute.xlu0 %2513 }
 0x6ea   : > { %v2340_v49 = vpop.permute.xlu1 %2339  ;;  %v2601_v50 = vpop.permute.xlu0 %2600 }
 0x6ee   : > { %v2427_v51 = vpop.permute.xlu1 %2426  ;;  %v4834_v55 = vpop.permute.xlu0 %2865 }
 0x6f2   : > { %v2688_v57 = vpop.permute.xlu1 %2687  ;;  %v2180_v58 = vpop.permute.xlu0 %2179 }
 0x6f6   : > { %v2777_v59 = vpop.permute.xlu1 %2776  ;;  %v2344_v60 = vpop.permute.xlu0 %2343 }
 0x6fa   : > { %v2178_v61 = vpop.permute.xlu1 %2177  ;;  %v2518_v62 = vpop.permute.xlu0 %2517 }
 0x6fb   : > { %v2181_v63 = vsel %vm517_vm4, %v2176_v47, %v2178_v61  ;;  %v2182_v1 = vsel %vm517_vm4, %v2178_v61, %v2180_v58 }
 0x6fc   : > { %3963 = vmatprep.subr.msk.mxu0 %vm523_vm5, %v2182_v1 }
 0x6fd   : > { %3964 = vmatpush1.msk.msra.mxu0 %vm523_vm5, %v2181_v63 }
 0x6fe   : > { %v2342_v4 = vpop.permute.xlu1 %2341  ;;  %3965 = vmatmul.mubr.msk.f32.vlgmr.msra.gmra.mrb[10].mxu0 %vm520_vm6, %v2172_v41  ;;  %3966 = vmatprep.subr.msk.mxu0 %vm523_vm5, %v2165_v39  ;;  %v2431_v5 = vpop.permute.xlu0 %2430 }
 0x6ff   : > { %v2345_v6 = vsel %vm684_vm7, %v2340_v49, %v2342_v4  ;;  %v2346_v7 = vsel %vm684_vm7, %v2342_v4, %v2344_v60  ;;  %3967 = vmatpush1.msk.msra.mxu0 %vm523_vm5, %v2168_v36  ;;  %2330 = vmatprep.mubr.f32.mxu0 %v4322_v0  ;;  %v3991_v4 = vld [vmem:[%s5068_s6 + $0xc] sm:$0xf] }
 0x700   : > { %3969 = vmatprep.subr.msk.mxu1 %vm523_vm5, %v2346_v7 }
 0x701   : > { %3970 = vmatpush1.msk.msra.mxu1 %vm523_vm5, %v2345_v6 }
 0x702   : > { %v2516_v8 = vpop.permute.xlu1 %2515  ;;  %3971 = vmatmul.mubr.msk.f32.vlgmr.msra.gmra.mrb[6].mxu1 %vm520_vm6, %v2338_v43  ;;  %v2605_v9 = vpop.permute.xlu0 %2604 }
 0x703   : > { %v2520_v10 = vsel %vm860_vm9, %v2516_v8, %v2518_v62  ;;  %2504 = vmatprep.mubr.f32.mxu1 %v4322_v0  ;;  %v2519_v11 = vsel %vm860_vm9, %v2514_v48, %v2516_v8 }
 0x704   : > { %3975 = vmatprep.subr.msk.mxu0 %vm523_vm5, %v2520_v10 }
 0x706   : > { %v2429_v12 = vpop.permute.xlu1 %2428  ;;  %3968 = vmatmul.mubr.msk.f32.vlgmr.msra.gmra.mrb[10].mxu0 %vm520_vm6, %v4784_v34  ;;  %v2692_v15 = vpop.permute.xlu0 %2691 }
 0x707   : > { %v2432_v13 = vsel %vm772_vm8, %v2427_v51, %v2429_v12  ;;  %v2433_v14 = vsel %vm772_vm8, %v2429_v12, %v2431_v5  ;;  %3976 = vmatpush1.msk.msra.mxu0 %vm523_vm5, %v2519_v11  ;;  %2591 = vmatprep.mubr.f32.mxu0 %v4322_v0 }
 0x708   : > { %3972 = vmatprep.subr.msk.mxu1 %vm523_vm5, %v2433_v14 }
 0x709   : > { %3973 = vmatpush1.msk.msra.mxu1 %vm523_vm5, %v2432_v13 }
 0x70a   : > { %v2603_v16 = vpop.permute.xlu1 %2602  ;;  %3974 = vmatmul.mubr.msk.f32.vlgmr.msra.gmra.mrb[6].mxu1 %vm520_vm6, %v2425_v45  ;;  %3977 = vmatmul.mubr.msk.f32.vlgmr.msra.gmra.mrb[12].mxu0 %vm520_vm6, %v2512_v42  ;;  %v2781_v19 = vpop.permute.xlu0 %2780 }
 0x70b   : > { %v2606_v17 = vsel %vm948_vm10, %v2601_v50, %v2603_v16  ;;  %v2607_v18 = vsel %vm948_vm10, %v2603_v16, %v2605_v9  ;;  %2678 = vmatprep.mubr.f32.mxu0 %v4322_v0  ;;  %2854 = vmatprep.mubr.f32.mxu1 %v4322_v0 }
 0x70c   : > { %3978 = vmatprep.subr.msk.mxu0 %vm523_vm5, %v2607_v18 }
 0x70d   : > { %3979 = vmatpush1.msk.msra.mxu0 %vm523_vm5, %v2606_v17 }
 0x70e   : > { %v2690_v20 = vpop.permute.xlu1 %2689  ;;  %v2870_v24 = vpop.permute.xlu0 %2869 }
 0x70f   : > { %v2694_v21 = vsel %vm1036_vm11, %v2690_v20, %v2692_v15  ;;  %v2693_v22 = vsel %vm1036_vm11, %v2688_v57, %v2690_v20 }
 0x710   : > { %3981 = vmatprep.subr.msk.mxu0 %vm523_vm5, %v2694_v21 }
 0x712   : > { %v2779_v23 = vpop.permute.xlu1 %2778  ;;  %3980 = vmatmul.mubr.msk.f32.vlgmr.msra.gmra.mrb[12].mxu0 %vm520_vm6, %v2599_v44  ;;  %v2864_v30 = vpop.permute.xlu0 %2863 }
 0x713   : > { %v2782_v25 = vsel %vm1126_vm12, %v2777_v59, %v2779_v23  ;;  %v2783_v26 = vsel %vm1126_vm12, %v2779_v23, %v2781_v19  ;;  %3982 = vmatpush1.msk.msra.mxu0 %vm523_vm5, %v2693_v22  ;;  %2765 = vmatprep.mubr.f32.mxu0 %v4322_v0  ;;  %v4900_v59 = vld [vmem:[%s5067_s5 + $0xc] sm:$0xf] }
 0x714   : > { %3984 = vmatprep.subr.msk.mxu1 %vm523_vm5, %v2783_v26 }
 0x715   : > { %3985 = vmatpush1.msk.msra.mxu1 %vm523_vm5, %v2782_v25 }
 0x716   : > { %v2868_v27 = vpop.permute.xlu1 %2867  ;;  %3983 = vmatmul.mubr.msk.f32.vlgmr.msra.gmra.mrb[10].mxu0 %vm520_vm6, %v4832_v46 }
 0x717   : > { %v2871_v28 = vsel %vm1216_vm13, %v4834_v55, %v2868_v27  ;;  %v2872_v29 = vsel %vm1216_vm13, %v2868_v27, %v2870_v24  ;;  %2943 = vmatprep.mubr.f32.mxu0 %v4322_v0 }
 0x718   : > { %3987 = vmatprep.subr.msk.mxu0 %vm523_vm5, %v2872_v29 }
 0x719   : > { %3988 = vmatpush1.msk.msra.mxu0 %vm523_vm5, %v2871_v28 }
 0x71a   : > { %v2775_v31 = vpop.permute.xlu1 %2774  ;;  %3989 = vmatmul.mubr.msk.f32.vlgmr.msra.gmra.mrb[12].mxu0 %vm520_vm6, %v2864_v30 }
 0x71b   : > { %3986 = vmatmul.mubr.msk.f32.vlgmr.msra.gmra.mrb[6].mxu1 %vm520_vm6, %v2775_v31  ;;  %3235 = vmatprep.mubr.f32.mxu0 %v4322_v0 }
 0x71c   : > { %3071 = vmatprep.mubr.f32.mxu1 %v4322_v0 }
 0x72b   : > { %v2963_v47 = vpop.permute.xlu1 %2962 }
 0x7e9   : > { %v2767_v34 = vpop.f32.mrb[10].mxu0 }
 0x7ea   : > { %v2769_v35 = vpop.f32.mrb[11].mxu0  ;;  %v2952_v36 = vmul.f32 %v2767_v34, %v4640_v52 }
 0x7eb   : > { %v2953_v38 = vmul.f32 %v2769_v35, %v4642_v56 }
 0x7ed   : > { %v2945_v37 = vpop.f32.mrb[12].mxu0 }
 0x7ee   : > { %v2956_v39 = vmul.f32 %v2945_v37, %v4649_v2  ;;  %v2856_v40 = vpop.f32.mrb[6].mxu1  ;;  %v2947_v41 = vpop.f32.mrb[13].mxu0 }
 0x7ef   : > { %v2954_v42 = vadd.f32 %v2952_v36, %v2856_v40  ;;  %v2957_v43 = vmul.f32 %v2947_v41, %v4651_v3  ;;  %v2858_v44 = vpop.f32.mrb[7].mxu1 }
 0x7f0   : > { %v2955_v45 = vadd.f32 %v2953_v38, %v2858_v44 }
 0x7f1   : > { %v2958_v46 = vadd.f32 %v2956_v39, %v2954_v42 }
 0x7f2   : > { %v2959_v48 = vadd.f32 %v2957_v43, %v2955_v45 }
 0x7f3   : > { %v2965_v49 = vadd.f32 %v2963_v47, %v2958_v46 }
 0x7f4   : > { %v2966_v50 = vadd.f32 %v2963_v47, %v2959_v48 }
 0x7f5   : > { %vm2967_vm0 = vcmp.gt.f32.partialorder %v2965_v49, 0.0  ;;  %v2969_v51 = vmul.f32 0.01, %v2965_v49 }
 0x7f6   : > { %vm2968_vm1 = vcmp.gt.f32.partialorder %v2966_v50, 0.0  ;;  %v2970_v55 = vmul.f32 0.01, %v2966_v50 }
 0x7f7   : > { %v2971_v57 = vsel %vm2967_vm0, %v2965_v49, %v2969_v51 }
 0x7f8   : > { %2979 = vrot.lane.b32.xlu0 %v2971_v57, %s5119_s16  ;;  %v2972_v58 = vsel %vm2968_vm1, %v2966_v50, %v2970_v55 }
 0x7f9   : > { %2981 = vrot.lane.b32.xlu1 %v2972_v58, %s5119_s16 }
 0x7fc   : > { %3155 = vrot.lane.b32.xlu0 %v4900_v59, %s4327_s14 }
 0x7fd   : > { %2989 = vrot.lane.b32.xlu1 %v4900_v59, %s4326_s9  ;;  %s5122_s9 = smov 126  }
 0x800   : > { %3242 = vrot.lane.b32.xlu0 %v4900_v59, %s5120_s0 }
 0x801   : > { %3329 = vrot.lane.b32.xlu1 %v4900_v59, %s5121_s1 }
 0x805   : > { %3416 = vrot.lane.b32.xlu1 %v4900_v59, %s5115_s19  ;;  %s4024_s19 = sshll.u32 %s4402_s28, 7  ;;  %s4340_s28 = smov [#allocation7]  }
 0x809   : > { %3503 = vrot.lane.b32.xlu1 %v4900_v59, %s5116_s29  ;;  %s295_s29 = sand.u32 1, %s4308_s25  }
 0x86a   : > { %v2980_v60 = vpop.permute.xlu0 %2979 }
 0x86b   : > { %v2986_v61 = vsel %vm500_vm3, 0.0, %v2980_v60  ;;  %v2982_v62 = vpop.permute.xlu1 %2981 }
 0x86c   : > { %2993 = vrot.lane.b32.xlu0 %v2986_v61, %s4327_s14  ;;  %3331 = vrot.lane.b32.xlu1 %v2986_v61, %s5117_s18  ;;  %v2987_v63 = vsel %vm500_vm3, %v2982_v62, 0.0  ;;  %v2983_v1 = vsel %vm500_vm3, %v2980_v60, %v2982_v62 }
 0x86e   : > { %v3156_v7 = vpop.permute.xlu0 %3155 }
 0x86f   : > { %v2990_v5 = vpop.permute.xlu1 %2989 }
 0x870   : > { %3157 = vrot.lane.b32.xlu0 %v2986_v61, %s5110_s17  ;;  %3418 = vrot.lane.b32.xlu1 %v2986_v61, %s5122_s9 }
 0x872   : > { %v3243_v9 = vpop.permute.xlu0 %3242 }
 0x873   : > { %v3330_v6 = vpop.permute.xlu1 %3329 }
 0x874   : > { %3244 = vrot.lane.b32.xlu0 %v2986_v61, %s5111_s8  ;;  %3683 = vrot.lane.b32.xlu1 %v2986_v61, %s5118_s21 }
 0x877   : > { %v3417_v8 = vpop.permute.xlu1 %3416 }
 0x878   : > { %3505 = vrot.lane.b32.xlu0 %v2986_v61, %s5112_s23  ;;  %2997 = vrot.lane.b32.xlu1 %v2987_v63, %s4327_s14 }
 0x87b   : > { %v4948_v10 = vpop.permute.xlu1 %3503 }
 0x87c   : > { %3594 = vrot.lane.b32.xlu0 %v2986_v61, %s5113_s15  ;;  %3161 = vrot.lane.b32.xlu1 %v2987_v63, %s5110_s17 }
 0x880   : > { %3335 = vrot.lane.b32.xlu1 %v2987_v63, %s5117_s18  ;;  %2995 = vrot.lane.b32.xlu0 %v2983_v1, %s4327_s14  ;;  %s3900_s14 = sshll.u32 %s295_s29, 3 }
 0x884   : > { %3248 = vrot.lane.b32.xlu1 %v2987_v63, %s5111_s8  ;;  %3159 = vrot.lane.b32.xlu0 %v2983_v1, %s5110_s17 }
 0x888   : > { %3422 = vrot.lane.b32.xlu1 %v2987_v63, %s5122_s9  ;;  %3333 = vrot.lane.b32.xlu0 %v2983_v1, %s5117_s18 }
 0x88c   : > { %3509 = vrot.lane.b32.xlu1 %v2987_v63, %s5112_s23  ;;  %3246 = vrot.lane.b32.xlu0 %v2983_v1, %s5111_s8 }
 0x890   : > { %3598 = vrot.lane.b32.xlu1 %v2987_v63, %s5113_s15  ;;  %3420 = vrot.lane.b32.xlu0 %v2983_v1, %s5122_s9 }
 0x894   : > { %3687 = vrot.lane.b32.xlu1 %v2987_v63, %s5118_s21  ;;  %3507 = vrot.lane.b32.xlu0 %v2983_v1, %s5112_s23 }
 0x898   : > { %3596 = vrot.lane.b32.xlu0 %v2983_v1, %s5113_s15  ;;  %3681 = vrot.lane.b32.xlu1 %v4900_v59, %s5112_s23  ;;  %s5020_s23 = scalar_lea.hbm %s5069_s7, %s4024_s19  ;;  %s3797_s15 = scalar_lea.sflag [#allocation4], %s295_s29 }
 0x89c   : > { %3685 = vrot.lane.b32.xlu0 %v2983_v1, %s5118_s21  ;;  %s4250_s21 = sshll.u32 %s4340_s28, 4  ;;  %s4251_s21 = int_to_ptr.vmem [resolvable:$false] %s4250_s21 }
 0x89d   : > { %s4252_s16 = scalar_lea.vmem %s4251_s21, 256 }
 0x8a0   : > { %3592 = vrot.lane.b32.xlu0 %v4900_v59, %s5114_s20  ;;  %s297_s20 = scalar_lea.vmem [#allocation7], %s3900_s14 }
 0x8a1   : > { %s3811_s22 = sshll.u32 %s297_s20, 4  ;;  %s5022_s22 = int_to_ptr.vmem [resolvable:$true] %s3811_s22 }
 0x8a2   : > { %s4246_s18 = scalar_lea.vmem %s5022_s22, 128  ;;  %p4253_p4 = scmp.lt.s32.totalorder %s5022_s22, %s4251_s21 }
 0x8a3   : > { %p4247_p12 = scmp.ne.s32.totalorder %s5022_s22, %s4246_s18  ;;  %p4254_p7 = scmp.lt.s32.totalorder %s4252_s16, %s4246_s18 }
 0x8a4   : > { %3780 = vperm.xlu0 %4188, %v3991_v4  }
 0x8a5   : > { %p4248_p2 = pnand %p4247_p12, %p5123_p1  ;;  %p4255_p8 = por %p4254_p7, %p4253_p4 }
 0x8a7   : > { %p4249_p3 = pneg %p4248_p2 }
 0x8a9   : > { %p4256_p11 = pnand %p4255_p8, %p4249_p3 }
 0x8de   : > { %v2994_v11 = vpop.permute.xlu0 %2993  ;;  %v3332_v12 = vpop.permute.xlu1 %3331 }
 0x8e2   : > { %v3158_v13 = vpop.permute.xlu0 %3157  ;;  %v3419_v14 = vpop.permute.xlu1 %3418 }
 0x8e6   : > { %v3245_v15 = vpop.permute.xlu0 %3244  ;;  %v4950_v16 = vpop.permute.xlu1 %3683 }
 0x8ea   : > { %v3506_v17 = vpop.permute.xlu0 %3505  ;;  %v2998_v18 = vpop.permute.xlu1 %2997 }
 0x8ee   : > { %v3595_v19 = vpop.permute.xlu0 %3594  ;;  %v3162_v20 = vpop.permute.xlu1 %3161 }
 0x8f2   : > { %v2996_v21 = vpop.permute.xlu0 %2995  ;;  %v3336_v22 = vpop.permute.xlu1 %3335 }
 0x8f3   : > { %v2999_v23 = vsel %vm517_vm4, %v2994_v11, %v2996_v21  ;;  %v3000_v24 = vsel %vm517_vm4, %v2996_v21, %v2998_v18 }
 0x8f4   : > { %3992 = vmatprep.subr.msk.mxu1 %vm523_vm5, %v3000_v24 }
 0x8f5   : > { %3993 = vmatpush1.msk.msra.mxu1 %vm523_vm5, %v2999_v23 }
 0x8f6   : > { %v3160_v25 = vpop.permute.xlu0 %3159  ;;  %3994 = vmatmul.mubr.msk.f32.vlgmr.msra.gmra.mrb[8].mxu1 %vm520_vm6, %v2990_v5  ;;  %3995 = vmatprep.subr.msk.mxu1 %vm523_vm5, %v2983_v1  ;;  %v3249_v26 = vpop.permute.xlu1 %3248 }
 0x8f7   : > { %v3163_v27 = vsel %vm684_vm7, %v3158_v13, %v3160_v25  ;;  %v3164_v28 = vsel %vm684_vm7, %v3160_v25, %v3162_v20  ;;  %3996 = vmatpush1.msk.msra.mxu1 %vm523_vm5, %v2986_v61  ;;  %3148 = vmatprep.mubr.f32.mxu1 %v4322_v0 }
 0x8f8   : > { %3998 = vmatprep.subr.msk.mxu0 %vm523_vm5, %v3164_v28 }
 0x8f9   : > { %3999 = vmatpush1.msk.msra.mxu0 %vm523_vm5, %v3163_v27 }
 0x8fa   : > { %v3334_v29 = vpop.permute.xlu0 %3333  ;;  %4000 = vmatmul.mubr.msk.f32.vlgmr.msra.gmra.mrb[14].mxu0 %vm520_vm6, %v3156_v7  ;;  %v3423_v30 = vpop.permute.xlu1 %3422 }
 0x8fb   : > { %v3338_v31 = vsel %vm860_vm9, %v3334_v29, %v3336_v22  ;;  %3322 = vmatprep.mubr.f32.mxu0 %v4322_v0  ;;  %v3337_v34 = vsel %vm860_vm9, %v3332_v12, %v3334_v29 }
 0x8fc   : > { %4004 = vmatprep.subr.msk.mxu1 %vm523_vm5, %v3338_v31 }
 0x8fe   : > { %v3247_v35 = vpop.permute.xlu0 %3246  ;;  %3997 = vmatmul.mubr.msk.f32.vlgmr.msra.gmra.mrb[8].mxu1 %vm520_vm6, %v4900_v59  ;;  %v3510_v38 = vpop.permute.xlu1 %3509 }
 0x8ff   : > { %v3250_v36 = vsel %vm772_vm8, %v3245_v15, %v3247_v35  ;;  %v3251_v37 = vsel %vm772_vm8, %v3247_v35, %v3249_v26  ;;  %4005 = vmatpush1.msk.msra.mxu1 %vm523_vm5, %v3337_v34  ;;  %3409 = vmatprep.mubr.f32.mxu1 %v4322_v0 }
 0x900   : > { %4001 = vmatprep.subr.msk.mxu0 %vm523_vm5, %v3251_v37 }
 0x901   : > { %4002 = vmatpush1.msk.msra.mxu0 %vm523_vm5, %v3250_v36 }
 0x902   : > { %v3421_v39 = vpop.permute.xlu0 %3420  ;;  %4003 = vmatmul.mubr.msk.f32.vlgmr.msra.gmra.mrb[14].mxu0 %vm520_vm6, %v3243_v9  ;;  %4006 = vmatmul.mubr.msk.f32.vlgmr.msra.gmra.mrb[10].mxu1 %vm520_vm6, %v3330_v6  ;;  %v3599_v42 = vpop.permute.xlu1 %3598 }
 0x903   : > { %v3424_v40 = vsel %vm948_vm10, %v3419_v14, %v3421_v39  ;;  %v3425_v41 = vsel %vm948_vm10, %v3421_v39, %v3423_v30  ;;  %3496 = vmatprep.mubr.f32.mxu1 %v4322_v0  ;;  %3672 = vmatprep.mubr.f32.mxu0 %v4322_v0 }
 0x904   : > { %4007 = vmatprep.subr.msk.mxu1 %vm523_vm5, %v3425_v41 }
 0x905   : > { %4008 = vmatpush1.msk.msra.mxu1 %vm523_vm5, %v3424_v40 }
 0x906   : > { %v3508_v43 = vpop.permute.xlu0 %3507  ;;  %v3688_v47 = vpop.permute.xlu1 %3687 }
 0x907   : > { %v3512_v44 = vsel %vm1036_vm11, %v3508_v43, %v3510_v38  ;;  %v3511_v45 = vsel %vm1036_vm11, %v3506_v17, %v3508_v43 }
 0x908   : > { %4010 = vmatprep.subr.msk.mxu1 %vm523_vm5, %v3512_v44 }
 0x90a   : > { %v3597_v46 = vpop.permute.xlu0 %3596  ;;  %4009 = vmatmul.mubr.msk.f32.vlgmr.msra.gmra.mrb[10].mxu1 %vm520_vm6, %v3417_v8  ;;  %v3682_v57 = vpop.permute.xlu1 %3681 }
 0x90b   : > { %v3600_v48 = vsel %vm1126_vm12, %v3595_v19, %v3597_v46  ;;  %v3601_v49 = vsel %vm1126_vm12, %v3597_v46, %v3599_v42  ;;  %4011 = vmatpush1.msk.msra.mxu1 %vm523_vm5, %v3511_v45  ;;  %3583 = vmatprep.mubr.f32.mxu1 %v4322_v0 }
 0x90c   : > { %4013 = vmatprep.subr.msk.mxu0 %vm523_vm5, %v3601_v49 }
 0x90d   : > { %4014 = vmatpush1.msk.msra.mxu0 %vm523_vm5, %v3600_v48 }
 0x90e   : > { %v3686_v50 = vpop.permute.xlu0 %3685  ;;  %4012 = vmatmul.mubr.msk.f32.vlgmr.msra.gmra.mrb[8].mxu1 %vm520_vm6, %v4948_v10 }
 0x90f   : > { %v3689_v51 = vsel %vm1216_vm13, %v4950_v16, %v3686_v50  ;;  %v3690_v55 = vsel %vm1216_vm13, %v3686_v50, %v3688_v47  ;;  %3761 = vmatprep.mubr.f32.mxu1 %v4322_v0 }
 0x910   : > { %4016 = vmatprep.subr.msk.mxu1 %vm523_vm5, %v3690_v55 }
 0x911   : > { %4017 = vmatpush1.msk.msra.mxu1 %vm523_vm5, %v3689_v51 }
 0x912   : > { %v3593_v58 = vpop.permute.xlu0 %3592  ;;  %4018 = vmatmul.mubr.msk.f32.vlgmr.msra.gmra.mrb[10].mxu1 %vm520_vm6, %v3682_v57 }
 0x913   : > { %4015 = vmatmul.mubr.msk.f32.vlgmr.msra.gmra.mrb[14].mxu0 %vm520_vm6, %v3593_v58 }
 0x923   : > { %v3781_v10 = vpop.permute.xlu0 %3780 }
 0x9e1   : > { %v3585_v59 = vpop.f32.mrb[8].mxu1 }
 0x9e2   : > { %v3587_v60 = vpop.f32.mrb[9].mxu1  ;;  %v3770_v61 = vmul.f32 %v3585_v59, %v4640_v52 }
 0x9e3   : > { %v3771_v63 = vmul.f32 %v3587_v60, %v4642_v56 }
 0x9e5   : > { %v3763_v62 = vpop.f32.mrb[10].mxu1 }
 0x9e6   : > { %v3774_v0 = vmul.f32 %v3763_v62, %v4649_v2  ;;  %v3674_v1 = vpop.f32.mrb[14].mxu0  ;;  %v3765_v4 = vpop.f32.mrb[11].mxu1 }
 0x9e7   : > { %v3772_v5 = vadd.f32 %v3770_v61, %v3674_v1  ;;  %v3775_v6 = vmul.f32 %v3765_v4, %v4651_v3  ;;  %v3676_v7 = vpop.f32.mrb[15].mxu0 }
 0x9e8   : > { %v3773_v8 = vadd.f32 %v3771_v63, %v3676_v7 }
 0x9e9   : > { %v3776_v9 = vadd.f32 %v3774_v0, %v3772_v5 }
 0x9ea   : > { %v3777_v11 = vadd.f32 %v3775_v6, %v3773_v8 }
 0x9eb   : > { %v3783_v12 = vadd.f32 %v3781_v10, %v3776_v9 }
 0x9ec   : > { %v3784_v52 = vadd.f32 %v3781_v10, %v3777_v11 }
 0x9ed   : > { %v3785_v13 = vadd.f32 %v3783_v12, %v4772_v32 }
 0x9ee   : > { %v3786_v56 = vadd.f32 %v3784_v52, %v4775_v33 }
 0x9ef   : > { %v3787_v2 = vadd.f32 %v3785_v13, %v4514_v53 }
 0x9f0   : > { %v3788_v14 = vadd.f32 %v3786_v56, %v4518_v54 }
 0x9f1   : > { %v3789_v3 = vadd.f32 %v3787_v2, %v4514_v53 }
 0x9f2   : > { %v3790_v15 = vadd.f32 %v3788_v14, %v4518_v54 }
 0x9f4   : > { %v3793_v16 = vcombine.low %v3789_v3, %v3790_v15 }
 0x9f6   : > { %3795 = vst [vmem:[%s297_s20] sm:$0xff] %v3793_v16 }
 0x9f7   : > { %4259 = shalt.err (!%p4256_p11)
}
 0x9f8   : > { %s4260_s13 = scalar_lea.hbm %s5020_s23, 128  ;;  %s4264_s1 = scalar_lea.hbm %s5069_s7, 256 }
 0x9f9   : > { %p4261_p13 = scmp.ne.s32.totalorder %s5020_s23, %s4260_s13  ;;  %p4265_p5 = scmp.lt.u32.totalorder %s5020_s23, %s5069_s7 }
 0x9fa   : > { %p4266_p9 = scmp.lt.u32.totalorder %s4264_s1, %s4260_s13  ;;  %p4268_p12 = scmp.lt.u32.totalorder %s4260_s13, %s5020_s23 }
 0x9fb   : > { %p4262_p0 = pnand %p4261_p13, %p5123_p1 }
 0x9fc   : > { %p4267_p10 = por %p4266_p9, %p4265_p5 }
 0x9fd   : > { %p4263_p6 = pneg %p4262_p0 }
 0x9fe   : > { %p4269_p2 = por %p4268_p12, %p4267_p10 }
 0xa00   : > { %p4270_p3 = pnand %p4269_p2, %p4263_p6 }
 0xa02   : > { %4273 = shalt.err (!%p4270_p3)
}
 0xa03   : > { %4116 = dma.vmem_to_hbm [thread:$0]  (%p5123_p1), %s5022_s22, 128, %s5020_s23, %s3797_s15  }
 0xa04 PF: > { %p4133_p4 = scmp.ge.s32.totalorder %s4316_s27, 2  ;;  %s3823_s19 = sand.u32 1, %s4304_s24  }
 0xa05   : > { %p5124_p7 = scmp.ne.s32.totalorder %s5100_s12, 0  ;;  %s3824_s20 = scalar_lea.sflag [#allocation4], %s3823_s19 }
 0xa07   : > { %p4126_p8 = pnand %p4133_p4, %p5124_p7 }
 0xa09   : > { %4299 = dma.done.wait (!%p4126_p8), %s3824_s20, 128  }
 0xa0a   : > { %4301 = vsyncadd (!%p4126_p8), %s3824_s20, 4294967168  ;;  %p19_p11 = scmp.ge.s32.totalorder %s4406_s30, 4   ;;  %s5125_s24 = smov %s4308_s25 }
 0xa0b   : > { %s5126_s25 = smov %s4312_s26  ;;  %s5127_s26 = smov %s4417_s10 }
 0xa0c   : > { %s5128_s27 = smov %s4406_s30  ;;  %21 = sbr.rel (!%p19_p11) target bundleno = 8 (0x8), region = 99 }
 0xa13   :  { %3829 = vsyncpa [#allocation3], 1 }
 0xa14   :  { %3831 = vsyncpa [#allocation3 + $0x1], 1 }
 0xa15   :  { %3832 = vsyncpa [#allocation6], 1 }
 0xa16   :  { %3833 = vsyncpa [#allocation4], 1 }
 0xa17   :  { %3835 = vsyncpa [#allocation4 + $0x1], 1 }

</bundles_post_ra>
